<compile_context>
chip_gen: v7x
topology: tpu7x:2x2x1
jax: 0.10.0
libtpu: 0.0.40
codegen_flags: <defaults>
</compile_context>

<pallas_src>
import jax
import jax.numpy as jnp
from jax import lax
from jax.experimental import pallas as pl
from jax.experimental.pallas import tpu as pltpu


def _qkT_kernel(q_ref, k_ref, o_ref):
    # q_ref, k_ref: (G, S, D) VMEM tiles ; o_ref: (G, S, S)
    # Batched Q @ K^T on the MXU: contract the last (D) dim of both operands,
    # batch over the leading head dim. The transpose of K is expressed purely
    # in the dimension numbers -- no data movement.
    scores = lax.dot_general(
        q_ref[...],
        k_ref[...],
        dimension_numbers=(((2,), (2,)), ((0,), (0,))),
        preferred_element_type=jnp.float32,
    )
    # Inputs are f32 so this cast is a no-op; kept for dtype robustness.
    o_ref[...] = scores.astype(o_ref.dtype)


def _round_up(x, m):
    return ((x + m - 1) // m) * m


def _device_kind():
    try:
        return jax.devices()[0].device_kind.lower()
    except Exception:
        return ""


def _per_step_vmem_bytes(g, s, d, dtype_bytes):
    """Double-buffered per-step VMEM footprint, accounting for lane/sublane
    padding of the (S, D) input tiles (D=64 pads to 128 lanes for f32)."""
    lane = 128
    sublane = 8
    s_pad = _round_up(s, sublane)
    d_pad = _round_up(d, lane)
    out_pad = _round_up(s, lane)
    per_head = (2 * s_pad * d_pad + s_pad * out_pad) * dtype_bytes
    return 2 * g * per_head  # x2 for double buffering


def _choose_heads_per_step(bh, s, d, dtype_bytes, *, num_tensorcores,
                           prefer_small_blocks,
                           vmem_budget=24 * 1024 * 1024):
    """Pick G = heads per grid step.

    Constraints / preferences:
      - G divides BH and the double-buffered footprint fits the budget.
      - step count is a multiple of num_tensorcores (even dual-TC sharding on
        v7x); falls back gracefully if BH is too small.
      - >= 2 steps when possible so the output DMA of step i-1 hides under
        step i's compute.
      - On v5e (prefer_small_blocks) choose the smallest viable G to shrink
        the un-overlapped prologue/epilogue DMA tail.
    NOTE: D=64 fills only 1/4 of the v6e/v7x MXU contraction depth (1/2 on
    v5e); that's fine -- this kernel is HBM/writeback-bound, not MXU-bound.
    """
    candidates = []
    for g in range(1, bh + 1):
        if bh % g:
            continue
        if _per_step_vmem_bytes(g, s, d, dtype_bytes) > vmem_budget:
            continue
        steps = bh // g
        if steps % num_tensorcores != 0 and bh >= num_tensorcores:
            continue
        if steps < 2 and bh > 1:
            continue
        candidates.append(g)
    if not candidates:
        return 1
    return min(candidates) if prefer_small_blocks else max(candidates)


def transpose_matmul(x509, x498):
    """matmul(x509, x498.transpose(-1, -2)).

    x509: [B, H, S, D], x498: [B, H, S, D] -> [B, H, S, S]
    """
    B, H, S, D = x509.shape
    assert x498.shape == (B, H, S, D)

    BH = B * H
    dtype_bytes = jnp.dtype(x509.dtype).itemsize

    kind = _device_kind()
    num_tensorcores = 2 if "v7" in kind else 1
    prefer_small_blocks = "v5" in kind  # v5e: minimize exposed DMA tail

    G = _choose_heads_per_step(
        BH, S, D, dtype_bytes,
        num_tensorcores=num_tensorcores,
        prefer_small_blocks=prefer_small_blocks,
    )
    steps = BH // G

    q = x509.reshape(BH, S, D)
    k = x498.reshape(BH, S, D)

    # VMEM limit derived from the actual per-step footprint (+50% headroom,
    # rounded up to a MiB), instead of a flat 32 MiB override.
    footprint = _per_step_vmem_bytes(G, S, D, dtype_bytes)
    vmem_limit = _round_up(int(footprint * 1.5) + (1 << 20), 1 << 20)

    cost = pl.CostEstimate(
        flops=2 * BH * S * S * D,
        transcendentals=0,
        bytes_accessed=2 * BH * S * D * dtype_bytes + BH * S * S * dtype_bytes,
    )

    out = pl.pallas_call(
        _qkT_kernel,
        out_shape=jax.ShapeDtypeStruct((BH, S, S), x509.dtype),
        grid_spec=pltpu.PrefetchScalarGridSpec(
            num_scalar_prefetch=0,
            grid=(steps,),
            in_specs=[
                pl.BlockSpec((G, S, D), lambda i: (i, 0, 0)),
                pl.BlockSpec((G, S, D), lambda i: (i, 0, 0)),
            ],
            out_specs=pl.BlockSpec((G, S, S), lambda i: (i, 0, 0)),
        ),
        compiler_params=pltpu.CompilerParams(
            dimension_semantics=("parallel",),
            vmem_limit_bytes=vmem_limit,
        ),
        cost_estimate=cost,
    )(q, k)

    return out.reshape(B, H, S, S)


if __name__ == "__main__":
    # Shapes implied by the module: x498, x509 both [1, 4, 384, 64]
    B, H, S, D = 1, 4, 384, 64
    key = jax.random.PRNGKey(0)
    k1, k2 = jax.random.split(key)
    x498 = jax.random.normal(k1, (B, H, S, D), dtype=jnp.float32)
    x509 = jax.random.normal(k2, (B, H, S, D), dtype=jnp.float32)

    out = transpose_matmul(x509, x498)
    out = jax.block_until_ready(out)

    # Reference check against plain JAX.
    ref = jnp.matmul(x509, jnp.swapaxes(x498, -1, -2))
    assert out.shape == (B, H, S, S), out.shape
    assert jnp.allclose(out, ref, atol=1e-4, rtol=1e-4), float(
        jnp.max(jnp.abs(out - ref))
    )

    print("KERNEL_OK")
</pallas_src>

<mosaic_0001>
module attributes {stable_mosaic.version = 11 : i64} {
  func.func @_qkT_kernel(%arg0: i32, %arg1: memref<2x384x64xf32, #tpu.memory_space<vmem>>, %arg2: memref<2x384x64xf32, #tpu.memory_space<vmem>>, %arg3: memref<2x384x384xf32, #tpu.memory_space<vmem>>) attributes {dimension_semantics = [#tpu.dimension_semantics<parallel>], iteration_bounds = array<i64: 2>, scalar_prefetch = 0 : i64, scratch_operands = 0 : i64, tpu.core_type = #tpu.core_type<tc>, window_params = [{transform_indices = @transform_0, window_bounds = array<i64: 2, 384, 64>}, {transform_indices = @transform_1, window_bounds = array<i64: 2, 384, 64>}, {transform_indices = @transform_2, window_bounds = array<i64: 2, 384, 384>}]} {
    %c0 = arith.constant 0 : index
    %c0_0 = arith.constant 0 : index
    %c0_1 = arith.constant 0 : index
    %0 = vector.load %arg1[%c0, %c0_0, %c0_1] : memref<2x384x64xf32, #tpu.memory_space<vmem>>, vector<2x384x64xf32>
    %c0_2 = arith.constant 0 : index
    %c0_3 = arith.constant 0 : index
    %c0_4 = arith.constant 0 : index
    %1 = vector.load %arg2[%c0_2, %c0_3, %c0_4] : memref<2x384x64xf32, #tpu.memory_space<vmem>>, vector<2x384x64xf32>
    %cst = arith.constant dense<0.000000e+00> : vector<2x384x384xf32>
    %2 = tpu.matmul %0, %1, %cst {dimension_numbers = #tpu.dot_dimension_numbers<[2], [2], [1], [1], [0, 0, 0, 1, 1, 1], [0], [0]>} : vector<2x384x64xf32>, vector<2x384x64xf32>, vector<2x384x384xf32> -> vector<2x384x384xf32>
    %c0_5 = arith.constant 0 : index
    %c0_6 = arith.constant 0 : index
    %c0_7 = arith.constant 0 : index
    %3 = vector.load %arg3[%c0_5, %c0_6, %c0_7] : memref<2x384x384xf32, #tpu.memory_space<vmem>>, vector<2x384x384xf32>
    tpu.vector_store %arg3[%c0_5, %c0_6, %c0_7], %2 {strides = array<i32>} : memref<2x384x384xf32, #tpu.memory_space<vmem>>, vector<2x384x384xf32>,
    return
  }
  func.func @transform_0(%arg0: i32) -> (i32, i32, i32) {
    %c0_i32 = arith.constant 0 : i32
    %c0_i32_0 = arith.constant 0 : i32
    %c0_i32_1 = arith.constant 0 : i32
    return %arg0, %c0_i32, %c0_i32_0 : i32, i32, i32
  }
  func.func @transform_1(%arg0: i32) -> (i32, i32, i32) {
    %c0_i32 = arith.constant 0 : i32
    %c0_i32_0 = arith.constant 0 : i32
    %c0_i32_1 = arith.constant 0 : i32
    return %arg0, %c0_i32, %c0_i32_0 : i32, i32, i32
  }
  func.func @transform_2(%arg0: i32) -> (i32, i32, i32) {
    %c0_i32 = arith.constant 0 : i32
    %c0_i32_0 = arith.constant 0 : i32
    %c0_i32_1 = arith.constant 0 : i32
    return %arg0, %c0_i32, %c0_i32_0 : i32, i32, i32
  }
}

</mosaic_0001>

<bundles_post_ra>
// kernel: tpu_custom_call.1
= control target key start
LH: loop header
LB: loop body
LE: loop exit
PB: predicated region body
PF: predicated region fallthrough
CT: control target
= control target key end

     0   :  { %7 = vsyncpa [#allocation3], 0  ;;  %s5276_s0 = inlined_call_operand.vmem [shape: f32[4,384,64], index: 0, kind: input, shape index: {}]   ;;  %s5277_s1 = inlined_call_operand.vmem [shape: f32[4,384,64], index: 1, kind: input, shape index: {}]   ;;  %s5278_s2 = inlined_call_operand.hbm [shape: f32[4,384,384], index: 2, kind: output, shape index: {}]  }
   0x1   :  { %9 = vsyncpa [#allocation3 + $0x1], 0  ;;  %s3846_s9 = smov 0   ;;  %s3848_s10 = smov 0  }
   0x2   :  { %s3850_s11 = smov 0   ;;  %s3852_s12 = smov 0  }
   0x3 LB: > { %s3867_s13 = sadd.s32 4294967295, %s3826_s12   ;;  %s2635_s14 = sadd.s32 4294967294, %s3826_s12   ;;  %s3826_s12 = sphi %s3852_s12, %s5286_s12   ;;  %s3822_s11 = sphi %s3850_s11, %s5285_s11   ;;  %s3818_s10 = sphi %s3848_s10, %s5284_s10   ;;  %s3814_s9 = sphi %s3846_s9, %s5283_s9  }
   0x4   : > { %s3871_s15 = sadd.s32 1, %s3826_s12   ;;  %s74_s16 = sadd.s32 1, %s3822_s11 }
   0x5   : > { %s71_s17 = ssub.s32 %s3826_s12, %s3871_s15  ;;  %p84_p0 = scmp.ne.s32.totalorder %s3822_s11, %s3818_s10 }
   0x6   : > { %p72_p1 = scmp.eq.s32.totalorder %s71_s17, 0  ;;  %p85_p2 = scmp.eq.s32.totalorder %s3867_s13, 1 }
   0x7   : > { %p90_p3 = scmp.ne.s32.totalorder %s3818_s10, %s3814_s9  ;;  %p91_p4 = scmp.eq.s32.totalorder %s2635_s14, 1 }
   0x8   : > { %s3882_s18 = scalar_select %p72_p1, %s3822_s11, %s74_s16  }
   0x9   : > { %p3884_p5 = por %p85_p2, %p84_p0  ;;  %p3888_p6 = por %p91_p4, %p90_p3 }
   0xa   : > { %p2638_p7 = scmp.ge.s32.totalorder %s3826_s12, 1  ;;  %p129_p8 = scmp.lt.s32.totalorder %s3826_s12, 3 }
   0xc   : > { %p130_p9 = pnand %p2638_p7, %p129_p8 }
   0xd   : > { %s2639_s21 = sshll.u32 (!%p130_p9), %s3867_s13, 1  ;;  %vm365_vm0 = vcmask (!%p130_p9), 523264   ;;  %s155_s29 = sand.u32 (!%p130_p9), 1, %s3818_s10  }
   0xe   : > { %133 = sbr.rel (%p130_p9) target bundleno = 605 (0x25d), region = 28  ;;  %p159_p10 = scmp.lt.s32.totalorder (!%p130_p9), %s2639_s21, 3  ;;  %vm3907_vm1 = vmpackc.low (!%p130_p9), %vm365_vm0, %vm365_vm0 }
   0xf   : > { %s3720_s30 = smul.u32 (!%p130_p9), 2304, %s155_s29  ;;  %s3828_s16 = smov (!%p130_p9), [#allocation2]  }
  0x10   : > { %s3722_s4 = smul.u32 (!%p130_p9), 36864, %s3867_s13  ;;  %s5235_s13 = scalar_lea.sflag (!%p130_p9), [#allocation3], %s155_s29 }
  0x11   : > { %s4775_s3 = scalar_lea.vmem (!%p130_p9), [#allocation2], %s3720_s30  ;;  %s3768_s17 = sshll.u32 (!%p130_p9), %s3828_s16, 4  ;;  %s3769_s17 = int_to_ptr.vmem [resolvable:$false] %s3768_s17 }
  0x12   : > { %s2561_s5 = sshll.u32 (!%p130_p9), %s4775_s3, 4  ;;  %s5225_s8 = scalar_lea.hbm (!%p130_p9), %s5278_s2, %s3722_s4  ;;  %s5227_s5 = int_to_ptr.vmem [resolvable:$true] %s2561_s5 }
  0x13   : > { %s3764_s14 = scalar_lea.vmem (!%p130_p9), %s5227_s5, 36864  ;;  %p3771_p0 = scmp.lt.s32.totalorder (!%p130_p9), %s5227_s5, %s3769_s17 }
  0x14   : > { %p3765_p11 = scmp.ne.s32.totalorder (!%p130_p9), %s5227_s5, %s3764_s14 }
  0x15   : > { %s5288_s21 = smov (!%p159_p10, %s2639_s21), 3 }
  0x16   : > { %s3721_s22 = smul.u32 384, %s5288_s21  ;;  %p3766_p12 = pnand %p3765_p11, %p3884_p5 }
  0x17   : > { %s3770_s21 = scalar_lea.vmem %s3769_s17, 73728 }
  0x18   : > { %s3903_s25 = scalar_lea.vmem %s5277_s1, %s3721_s22  ;;  %s3952_s28 = scalar_lea.vmem %s5276_s0, %s3721_s22 }
  0x19   : > { %v285_v1 = vld [vmem:[%s3903_s25 + $0x80] sm:$0xff]  ;;  %v286_v2 = vld [vmem:[%s3903_s25 + $0x88] sm:$0xff]  ;;  %v287_v10 = vld [vmem:[%s3903_s25 + $0x90] sm:$0xff]  ;;  %p3767_p13 = pneg %p3766_p12  ;;  %p3772_p1 = scmp.lt.s32.totalorder %s3770_s21, %s3764_s14 }
  0x1a   : > { %v301_v3 = vld [vmem:[%s3903_s25 + $0x100] sm:$0xff]  ;;  %v3528_v4 = vpack.c.bf16 %v286_v2, %v285_v1  ;;  %v302_v5 = vld [vmem:[%s3903_s25 + $0x108] sm:$0xff]  ;;  %v288_v11 = vld [vmem:[%s3903_s25 + $0x98] sm:$0xff] }
  0x1b   : > { %v269_v6 = vld [vmem:[%s3903_s25] sm:$0xff]  ;;  %v270_v7 = vld [vmem:[%s3903_s25 + $0x8] sm:$0xff]  ;;  %v3576_v8 = vpack.c.bf16 %v302_v5, %v301_v3  ;;  %v303_v12 = vld [vmem:[%s3903_s25 + $0x110] sm:$0xff]  ;;  %v3534_v13 = vpack.c.bf16 %v288_v11, %v287_v10  ;;  %p3773_p2 = por %p3772_p1, %p3771_p0 }
  0x1c   : > { %v3531_v9 = vpack.c.bf16 %v270_v7, %v269_v6  ;;  %3530 = vmatprep.subr.msk.bf16.mxu0 %vm3907_vm1, %v3528_v4  ;;  %v304_v14 = vld [vmem:[%s3903_s25 + $0x118] sm:$0xff]  ;;  %v271_v16 = vld [vmem:[%s3903_s25 + $0x10] sm:$0xff]  ;;  %v289_v18 = vld [vmem:[%s3903_s25 + $0xa0] sm:$0xff] }
  0x1d   : > { %3578 = vmatprep.subr.msk.bf16.mxu1 %vm3907_vm1, %v3576_v8  ;;  %v3582_v15 = vpack.c.bf16 %v304_v14, %v303_v12  ;;  %v272_v17 = vld [vmem:[%s3903_s25 + $0x18] sm:$0xff]  ;;  %v290_v19 = vld [vmem:[%s3903_s25 + $0xa8] sm:$0xff]  ;;  %v305_v20 = vld [vmem:[%s3903_s25 + $0x120] sm:$0xff]  ;;  %p3774_p3 = pnand %p3773_p2, %p3767_p13 }
  0x1e   : > { %3533 = vmatpush3.bf16.xpose.msk.msra.mxu0 %vm3907_vm1, %v3531_v9  ;;  %3581 = vmatpush3.bf16.xpose.msk.msra.mxu1 %vm3907_vm1, %v3576_v8  ;;  %v306_v21 = vld [vmem:[%s3903_s25 + $0x128] sm:$0xff]  ;;  %v3537_v22 = vpack.c.bf16 %v272_v17, %v271_v16  ;;  %v3540_v23 = vpack.c.bf16 %v290_v19, %v289_v18  ;;  %v273_v25 = vld [vmem:[%s3903_s25 + $0x20] sm:$0xff]  ;;  %v291_v27 = vld [vmem:[%s3903_s25 + $0xb0] sm:$0xff] }
  0x1f   : > { %3536 = vmatprep.subr.msk.bf16.mxu0 %vm3907_vm1, %v3534_v13  ;;  %3584 = vmatprep.subr.msk.bf16.mxu1 %vm3907_vm1, %v3582_v15  ;;  %v3588_v24 = vpack.c.bf16 %v306_v21, %v305_v20  ;;  %v274_v26 = vld [vmem:[%s3903_s25 + $0x28] sm:$0xff]  ;;  %v292_v28 = vld [vmem:[%s3903_s25 + $0xb8] sm:$0xff]  ;;  %v307_v29 = vld [vmem:[%s3903_s25 + $0x130] sm:$0xff] }
  0x20   : > { %v308_v30 = vld [vmem:[%s3903_s25 + $0x138] sm:$0xff]  ;;  %v3543_v31 = vpack.c.bf16 %v274_v26, %v273_v25  ;;  %v3961_v32 = vld [vmem:[%s3952_s28] sm:$0xff]  ;;  %v3546_v33 = vpack.c.bf16 %v292_v28, %v291_v27  ;;  %v275_v35 = vld [vmem:[%s3903_s25 + $0x30] sm:$0xff] }
  0x21   : > { %2968 = vmatprep.mubr.msk.f32.mxu0 %vm365_vm0, %v3961_v32  ;;  %3352 = vmatprep.mubr.msk.f32.mxu1 %vm365_vm0, %v3961_v32  ;;  %v3594_v34 = vpack.c.bf16 %v308_v30, %v307_v29  ;;  %v276_v36 = vld [vmem:[%s3903_s25 + $0x38] sm:$0xff]  ;;  %v293_v37 = vld [vmem:[%s3903_s25 + $0xc0] sm:$0xff]  ;;  %v294_v38 = vld [vmem:[%s3903_s25 + $0xc8] sm:$0xff] }
  0x22   : > { %v309_v39 = vld [vmem:[%s3903_s25 + $0x140] sm:$0xff]  ;;  %v310_v40 = vld [vmem:[%s3903_s25 + $0x148] sm:$0xff]  ;;  %v3549_v41 = vpack.c.bf16 %v276_v36, %v275_v35  ;;  %v3552_v42 = vpack.c.bf16 %v294_v38, %v293_v37  ;;  %v295_v46 = vld [vmem:[%s3903_s25 + $0xd0] sm:$0xff] }
  0x23   : > { %v3600_v43 = vpack.c.bf16 %v310_v40, %v309_v39  ;;  %v277_v44 = vld [vmem:[%s3903_s25 + $0x40] sm:$0xff]  ;;  %v278_v45 = vld [vmem:[%s3903_s25 + $0x48] sm:$0xff]  ;;  %v296_v47 = vld [vmem:[%s3903_s25 + $0xd8] sm:$0xff] }
  0x24   : > { %v311_v48 = vld [vmem:[%s3903_s25 + $0x150] sm:$0xff]  ;;  %v312_v49 = vld [vmem:[%s3903_s25 + $0x158] sm:$0xff]  ;;  %v3555_v50 = vpack.c.bf16 %v278_v45, %v277_v44  ;;  %v3558_v51 = vpack.c.bf16 %v296_v47, %v295_v46  ;;  %v297_v55 = vld [vmem:[%s3903_s25 + $0xe0] sm:$0xff] }
  0x25   : > { %v3606_v52 = vpack.c.bf16 %v312_v49, %v311_v48  ;;  %v279_v53 = vld [vmem:[%s3903_s25 + $0x50] sm:$0xff]  ;;  %v280_v54 = vld [vmem:[%s3903_s25 + $0x58] sm:$0xff]  ;;  %v298_v56 = vld [vmem:[%s3903_s25 + $0xe8] sm:$0xff] }
  0x26   : > { %3539 = vmatpush3.bf16.xpose.msk.msra.mxu0 %vm3907_vm1, %v3537_v22  ;;  %3587 = vmatpush3.bf16.xpose.msk.msra.mxu1 %vm3907_vm1, %v3582_v15  ;;  %v313_v57 = vld [vmem:[%s3903_s25 + $0x160] sm:$0xff]  ;;  %v314_v58 = vld [vmem:[%s3903_s25 + $0x168] sm:$0xff]  ;;  %v3561_v59 = vpack.c.bf16 %v280_v54, %v279_v53  ;;  %v3564_v60 = vpack.c.bf16 %v298_v56, %v297_v55  ;;  %v299_v1 = vld [vmem:[%s3903_s25 + $0xf0] sm:$0xff] }
  0x27   : > { %3542 = vmatprep.subr.msk.bf16.mxu0 %vm3907_vm1, %v3540_v23  ;;  %3590 = vmatprep.subr.msk.bf16.mxu1 %vm3907_vm1, %v3588_v24  ;;  %v3612_v61 = vpack.c.bf16 %v314_v58, %v313_v57  ;;  %v281_v62 = vld [vmem:[%s3903_s25 + $0x60] sm:$0xff]  ;;  %v282_v63 = vld [vmem:[%s3903_s25 + $0x68] sm:$0xff]  ;;  %v300_v2 = vld [vmem:[%s3903_s25 + $0xf8] sm:$0xff] }
  0x28   : > { %v315_v3 = vld [vmem:[%s3903_s25 + $0x170] sm:$0xff]  ;;  %v316_v4 = vld [vmem:[%s3903_s25 + $0x178] sm:$0xff]  ;;  %v3567_v5 = vpack.c.bf16 %v282_v63, %v281_v62  ;;  %v3570_v6 = vpack.c.bf16 %v300_v2, %v299_v1  ;;  %v349_v10 = vld [vmem:[%s3903_s25 + $0x280] sm:$0xff] }
  0x29   : > { %v3618_v7 = vpack.c.bf16 %v316_v4, %v315_v3  ;;  %v283_v8 = vld [vmem:[%s3903_s25 + $0x70] sm:$0xff]  ;;  %v284_v9 = vld [vmem:[%s3903_s25 + $0x78] sm:$0xff]  ;;  %v350_v11 = vld [vmem:[%s3903_s25 + $0x288] sm:$0xff] }
  0x2a   : > { %v333_v12 = vld [vmem:[%s3903_s25 + $0x200] sm:$0xff]  ;;  %v334_v13 = vld [vmem:[%s3903_s25 + $0x208] sm:$0xff]  ;;  %v3573_v14 = vpack.c.bf16 %v284_v9, %v283_v8  ;;  %v3672_v15 = vpack.c.bf16 %v350_v11, %v349_v10  ;;  %v335_v19 = vld [vmem:[%s3903_s25 + $0x210] sm:$0xff] }
  0x2b   : > { %v3624_v16 = vpack.c.bf16 %v334_v13, %v333_v12  ;;  %v317_v17 = vld [vmem:[%s3903_s25 + $0x180] sm:$0xff]  ;;  %v318_v18 = vld [vmem:[%s3903_s25 + $0x188] sm:$0xff]  ;;  %v336_v20 = vld [vmem:[%s3903_s25 + $0x218] sm:$0xff] }
  0x2c   : > { %v351_v21 = vld [vmem:[%s3903_s25 + $0x290] sm:$0xff]  ;;  %v352_v22 = vld [vmem:[%s3903_s25 + $0x298] sm:$0xff]  ;;  %v174_v23 = vld [vmem:[%s3952_s28 + $0x8] sm:$0xff]  ;;  %v3630_v25 = vpack.c.bf16 %v336_v20, %v335_v19 }
  0x2d   : > { %v175_v26 = vld [vmem:[%s3952_s28 + $0x10] sm:$0xff]  ;;  %v3678_v27 = vpack.c.bf16 %v352_v22, %v351_v21  ;;  %v176_v28 = vld [vmem:[%s3952_s28 + $0x18] sm:$0xff]  ;;  %v177_v29 = vld [vmem:[%s3952_s28 + $0x20] sm:$0xff] }
  0x2e   : > { %3545 = vmatpush3.bf16.xpose.msk.msra.mxu0 %vm3907_vm1, %v3543_v31  ;;  %3593 = vmatpush3.bf16.xpose.msk.msra.mxu1 %vm3907_vm1, %v3588_v24  ;;  %v3627_v24 = vpack.c.bf16 %v318_v18, %v317_v17  ;;  %v319_v30 = vld [vmem:[%s3903_s25 + $0x190] sm:$0xff]  ;;  %v320_v31 = vld [vmem:[%s3903_s25 + $0x198] sm:$0xff]  ;;  %v354_v35 = vld [vmem:[%s3903_s25 + $0x2a8] sm:$0xff] }
  0x2f   : > { %3548 = vmatprep.subr.msk.bf16.mxu0 %vm3907_vm1, %v3546_v33  ;;  %3596 = vmatprep.subr.msk.bf16.mxu1 %vm3907_vm1, %v3594_v34  ;;  %v338_v33 = vld [vmem:[%s3903_s25 + $0x228] sm:$0xff]  ;;  %v3633_v37 = vpack.c.bf16 %v320_v31, %v319_v30  ;;  %v179_v38 = vld [vmem:[%s3952_s28 + $0x30] sm:$0xff]  ;;  %v340_v46 = vld [vmem:[%s3903_s25 + $0x238] sm:$0xff] }
  0x30   : > { %v178_v36 = vld [vmem:[%s3952_s28 + $0x28] sm:$0xff]  ;;  %v339_v45 = vld [vmem:[%s3903_s25 + $0x230] sm:$0xff]  ;;  %v356_v48 = vld [vmem:[%s3903_s25 + $0x2b8] sm:$0xff] }
  0x31   : > { %v322_v44 = vld [vmem:[%s3903_s25 + $0x1a8] sm:$0xff]  ;;  %v355_v47 = vld [vmem:[%s3903_s25 + $0x2b0] sm:$0xff]  ;;  %v4120_v54 = vld [vmem:[%s3952_s28 + $0x58] sm:$0xff] }
  0x32   : > { %v4108_v49 = vld [vmem:[%s3952_s28 + $0x48] sm:$0xff]  ;;  %v3690_v53 = vpack.c.bf16 %v356_v48, %v355_v47  ;;  %v4125_v55 = vld [vmem:[%s3952_s28 + $0x60] sm:$0xff]  ;;  %v323_v56 = vld [vmem:[%s3903_s25 + $0x1b0] sm:$0xff] }
  0x33   : > { %v324_v57 = vld [vmem:[%s3903_s25 + $0x1b8] sm:$0xff]  ;;  %v341_v58 = vld [vmem:[%s3903_s25 + $0x240] sm:$0xff]  ;;  %v4146_v62 = vld [vmem:[%s3952_s28 + $0x68] sm:$0xff] }
  0x34   : > { %v3645_v63 = vpack.c.bf16 %v324_v57, %v323_v56  ;;  %v4149_v1 = vld [vmem:[%s3952_s28 + $0x70] sm:$0xff]  ;;  %v4158_v4 = vld [vmem:[%s3952_s28 + $0x78] sm:$0xff]  ;;  %v4185_v12 = vld [vmem:[%s3952_s28 + $0x88] sm:$0xff] }
  0x35   : > { %v343_v8 = vld [vmem:[%s3903_s25 + $0x250] sm:$0xff]  ;;  %v344_v9 = vld [vmem:[%s3903_s25 + $0x258] sm:$0xff]  ;;  %v4204_v18 = vld [vmem:[%s3952_s28 + $0xa0] sm:$0xff] }
  0x36   : > { %3551 = vmatpush3.bf16.xpose.msk.msra.mxu0 %vm3907_vm1, %v3549_v41  ;;  %3599 = vmatpush3.bf16.xpose.msk.msra.mxu1 %vm3907_vm1, %v3594_v34  ;;  %v353_v34 = vld [vmem:[%s3903_s25 + $0x2a0] sm:$0xff]  ;;  %v180_v41 = vld [vmem:[%s3952_s28 + $0x38] sm:$0xff]  ;;  %v359_v10 = vld [vmem:[%s3903_s25 + $0x2d0] sm:$0xff] }
  0x37   : > { %3554 = vmatprep.subr.msk.bf16.mxu0 %vm3907_vm1, %v3552_v42  ;;  %3602 = vmatprep.subr.msk.bf16.mxu1 %vm3907_vm1, %v3600_v43  ;;  %v3684_v40 = vpack.c.bf16 %v354_v35, %v353_v34  ;;  %v4088_v42 = vld [vmem:[%s3952_s28 + $0x40] sm:$0xff]  ;;  %v360_v11 = vld [vmem:[%s3903_s25 + $0x2d8] sm:$0xff]  ;;  %v327_v19 = vld [vmem:[%s3903_s25 + $0x1d0] sm:$0xff] }
  0x38   : > { %v4199_v17 = vld [vmem:[%s3952_s28 + $0x98] sm:$0xff]  ;;  %v345_v21 = vld [vmem:[%s3903_s25 + $0x260] sm:$0xff]  ;;  %v346_v22 = vld [vmem:[%s3903_s25 + $0x268] sm:$0xff] }
  0x39   : > { %v328_v20 = vld [vmem:[%s3903_s25 + $0x1d8] sm:$0xff]  ;;  %v4246_v31 = vld [vmem:[%s3952_s28 + $0xc0] sm:$0xff]  ;;  %v347_v34 = vld [vmem:[%s3903_s25 + $0x270] sm:$0xff] }
  0x3a   : > { %v4241_v30 = vld [vmem:[%s3952_s28 + $0xb8] sm:$0xff]  ;;  %v4307_v47 = vld [vmem:[%s3952_s28 + $0xe8] sm:$0xff]  ;;  %v4370_v56 = vld [vmem:[%s3952_s28 + $0x130] sm:$0xff] }
  0x3b   : > { %v348_v35 = vld [vmem:[%s3903_s25 + $0x278] sm:$0xff] }
  0x3c   : > { %v4353_v0 = vld [vmem:[%s3952_s28 + $0x118] sm:$0xff] }
  0x3d   : > { %v4381_v57 = vld [vmem:[%s3952_s28 + $0x138] sm:$0xff] }
  0x3e   : > { %3557 = vmatpush3.bf16.xpose.msk.msra.mxu0 %vm3907_vm1, %v3555_v50  ;;  %3605 = vmatpush3.bf16.xpose.msk.msra.mxu1 %vm3907_vm1, %v3600_v43  ;;  %v321_v43 = vld [vmem:[%s3903_s25 + $0x1a0] sm:$0xff] }
  0x3f   : > { %3560 = vmatprep.subr.msk.bf16.mxu0 %vm3907_vm1, %v3558_v51  ;;  %3608 = vmatprep.subr.msk.bf16.mxu1 %vm3907_vm1, %v3606_v52  ;;  %v3639_v50 = vpack.c.bf16 %v322_v44, %v321_v43  ;;  %v4111_v51 = vld [vmem:[%s3952_s28 + $0x50] sm:$0xff]  ;;  %v4283_v43 = vld [vmem:[%s3952_s28 + $0xd8] sm:$0xff]  ;;  %v4288_v44 = vld [vmem:[%s3952_s28 + $0xe0] sm:$0xff] }
  0x46   : > { %3563 = vmatpush3.bf16.xpose.msk.msra.mxu0 %vm3907_vm1, %v3561_v59  ;;  %3611 = vmatpush3.bf16.xpose.msk.msra.mxu1 %vm3907_vm1, %v3606_v52  ;;  %v3642_v52 = vpack.c.bf16 %v340_v46, %v339_v45  ;;  %v342_v59 = vld [vmem:[%s3903_s25 + $0x248] sm:$0xff]  ;;  %v331_v45 = vld [vmem:[%s3903_s25 + $0x1f0] sm:$0xff]  ;;  %v332_v46 = vld [vmem:[%s3903_s25 + $0x1f8] sm:$0xff] }
  0x47   : > { %3566 = vmatprep.subr.msk.bf16.mxu0 %vm3907_vm1, %v3564_v60  ;;  %3614 = vmatprep.subr.msk.bf16.mxu1 %vm3907_vm1, %v3612_v61  ;;  %v357_v60 = vld [vmem:[%s3903_s25 + $0x2c0] sm:$0xff]  ;;  %v3648_v2 = vpack.c.bf16 %v342_v59, %v341_v58  ;;  %v3669_v48 = vpack.c.bf16 %v332_v46, %v331_v45  ;;  %v4395_v59 = vld [vmem:[%s3952_s28 + $0x148] sm:$0xff] }
  0x48   : > { %v4384_v58 = vld [vmem:[%s3952_s28 + $0x140] sm:$0xff] }
  0x4e   : > { %3569 = vmatpush3.bf16.xpose.msk.msra.mxu0 %vm3907_vm1, %v3567_v5  ;;  %3617 = vmatpush3.bf16.xpose.msk.msra.mxu1 %vm3907_vm1, %v3612_v61  ;;  %v358_v61 = vld [vmem:[%s3903_s25 + $0x2c8] sm:$0xff]  ;;  %v4163_v5 = vld [vmem:[%s3952_s28 + $0x80] sm:$0xff] }
  0x4f   : > { %3572 = vmatprep.subr.msk.bf16.mxu0 %vm3907_vm1, %v3570_v6  ;;  %3620 = vmatprep.subr.msk.bf16.mxu1 %vm3907_vm1, %v3618_v7  ;;  %v3696_v3 = vpack.c.bf16 %v358_v61, %v357_v60  ;;  %v325_v6 = vld [vmem:[%s3903_s25 + $0x1c0] sm:$0xff]  ;;  %v4398_v60 = vld [vmem:[%s3952_s28 + $0x150] sm:$0xff]  ;;  %v4409_v61 = vld [vmem:[%s3952_s28 + $0x158] sm:$0xff] }
  0x56   : > { %3575 = vmatpush3.bf16.xpose.msk.msra.mxu0 %vm3907_vm1, %v3573_v14  ;;  %3623 = vmatpush3.bf16.xpose.msk.msra.mxu1 %vm3907_vm1, %v3618_v7  ;;  %v326_v7 = vld [vmem:[%s3903_s25 + $0x1c8] sm:$0xff]  ;;  %v4188_v14 = vld [vmem:[%s3952_s28 + $0x90] sm:$0xff] }
  0x57   : > { %3674 = vmatprep.subr.msk.bf16.mxu0 %vm3907_vm1, %v3672_v15  ;;  %3626 = vmatprep.subr.msk.bf16.mxu1 %vm3907_vm1, %v3624_v16  ;;  %v3651_v13 = vpack.c.bf16 %v326_v7, %v325_v6  ;;  %v3702_v16 = vpack.c.bf16 %v360_v11, %v359_v10  ;;  %v4473_v6 = vld [vmem:[%s3952_s28 + $0x198] sm:$0xff]  ;;  %v4484_v7 = vld [vmem:[%s3952_s28 + $0x1a0] sm:$0xff] }
  0x58   : > { %v4517_v10 = vld [vmem:[%s3952_s28 + $0x1b8] sm:$0xff]  ;;  %v4528_v11 = vld [vmem:[%s3952_s28 + $0x1c0] sm:$0xff] }
  0x5d   : > { %2969 = vmatmul.mubr.msk.f32.vlgmr.msra.gmra.mrb[0].mxu0 %vm365_vm0, %v3961_v32  ;;  %3353 = vmatmul.mubr.msk.f32.vlgmr.msra.gmra.mrb[0].mxu1 %vm365_vm0, %v174_v23  ;;  %v337_v32 = vld [vmem:[%s3903_s25 + $0x220] sm:$0xff] }
  0x5e   : > { %3677 = vmatpush3.bf16.xpose.msk.msra.mxu0 %vm3907_vm1, %v3672_v15  ;;  %3629 = vmatpush3.bf16.xpose.msk.msra.mxu1 %vm3907_vm1, %v3627_v24  ;;  %v3636_v39 = vpack.c.bf16 %v338_v33, %v337_v32  ;;  %v3654_v15 = vpack.c.bf16 %v344_v9, %v343_v8  ;;  %v362_v24 = vld [vmem:[%s3903_s25 + $0x2e8] sm:$0xff]  ;;  %v329_v32 = vld [vmem:[%s3903_s25 + $0x1e0] sm:$0xff]  ;;  %v4506_v9 = vld [vmem:[%s3952_s28 + $0x1b0] sm:$0xff] }
  0x5f   : > { %2970 = vmatprep.mubr.msk.f32.mxu0 %vm365_vm0, %v174_v23  ;;  %3355 = vmatprep.mubr.msk.f32.mxu1 %vm365_vm0, %v175_v26  ;;  %v330_v33 = vld [vmem:[%s3903_s25 + $0x1e8] sm:$0xff] }
  0x60   : > { %3632 = vmatprep.subr.msk.bf16.mxu1 %vm3907_vm1, %v3630_v25  ;;  %3680 = vmatprep.subr.msk.bf16.mxu0 %vm3907_vm1, %v3678_v27  ;;  %v4227_v25 = vld [vmem:[%s3952_s28 + $0xa8] sm:$0xff] }
  0x61   : > { %2971 = vmatmul.mubr.msk.f32.gmra.mrb[2].mxu0 %vm365_vm0, %v174_v23  ;;  %3356 = vmatmul.mubr.msk.f32.gmra.mrb[2].mxu1 %vm365_vm0, %v176_v28  ;;  %v361_v23 = vld [vmem:[%s3903_s25 + $0x2e0] sm:$0xff]  ;;  %v4495_v8 = vld [vmem:[%s3952_s28 + $0x1a8] sm:$0xff] }
  0x62   : > { %2972 = vmatprep.mubr.msk.f32.mxu0 %vm365_vm0, %v175_v26  ;;  %3358 = vmatprep.mubr.msk.f32.mxu1 %vm365_vm0, %v177_v29 }
  0x65   : > { %2973 = vmatmul.mubr.msk.f32.gmra.mrb[4].mxu0 %vm365_vm0, %v175_v26  ;;  %3359 = vmatmul.mubr.msk.f32.gmra.mrb[4].mxu1 %vm365_vm0, %v178_v36  ;;  %v3657_v26 = vpack.c.bf16 %v328_v20, %v327_v19  ;;  %v4616_v19 = vld [vmem:[%s3952_s28 + $0x200] sm:$0xff]  ;;  %v4627_v20 = vld [vmem:[%s3952_s28 + $0x208] sm:$0xff] }
  0x66   : > { %2974 = vmatprep.mubr.msk.f32.mxu0 %vm365_vm0, %v176_v28  ;;  %3361 = vmatprep.mubr.msk.f32.mxu1 %vm365_vm0, %v179_v38 }
  0x67   : > { %3635 = vmatpush3.bf16.xpose.msk.msra.mxu1 %vm3907_vm1, %v3633_v37  ;;  %3683 = vmatpush3.bf16.xpose.msk.msra.mxu0 %vm3907_vm1, %v3678_v27  ;;  %v4230_v27 = vld [vmem:[%s3952_s28 + $0xb0] sm:$0xff]  ;;  %v364_v37 = vld [vmem:[%s3903_s25 + $0x2f8] sm:$0xff] }
  0x68   : > { %3638 = vmatprep.subr.msk.bf16.mxu1 %vm3907_vm1, %v3636_v39  ;;  %3686 = vmatprep.subr.msk.bf16.mxu0 %vm3907_vm1, %v3684_v40  ;;  %v3663_v39 = vpack.c.bf16 %v330_v33, %v329_v32  ;;  %v4762_v32 = vld [vmem:[%s3952_s28 + $0x268] sm:$0xff] }
  0x69   : > { %2975 = vmatmul.mubr.msk.f32.gmra.mrb[6].mxu0 %vm365_vm0, %v176_v28  ;;  %3362 = vmatmul.mubr.msk.f32.gmra.mrb[6].mxu1 %vm365_vm0, %v180_v41  ;;  %v3660_v28 = vpack.c.bf16 %v346_v22, %v345_v21  ;;  %v4638_v21 = vld [vmem:[%s3952_s28 + $0x210] sm:$0xff]  ;;  %v4649_v22 = vld [vmem:[%s3952_s28 + $0x218] sm:$0xff] }
  0x6a   : > { %2976 = vmatprep.mubr.msk.f32.mxu0 %vm365_vm0, %v177_v29  ;;  %3364 = vmatprep.mubr.msk.f32.mxu1 %vm365_vm0, %v4088_v42 }
  0x6d   : > { %2977 = vmatmul.mubr.msk.f32.gmra.mrb[8].mxu0 %vm365_vm0, %v177_v29  ;;  %3365 = vmatmul.mubr.msk.f32.gmra.mrb[8].mxu1 %vm365_vm0, %v4108_v49  ;;  %v3708_v29 = vpack.c.bf16 %v362_v24, %v361_v23  ;;  %v4660_v23 = vld [vmem:[%s3952_s28 + $0x220] sm:$0xff]  ;;  %v4671_v24 = vld [vmem:[%s3952_s28 + $0x228] sm:$0xff] }
  0x6e   : > { %2978 = vmatprep.mubr.msk.f32.mxu0 %vm365_vm0, %v178_v36  ;;  %3367 = vmatprep.mubr.msk.f32.mxu1 %vm365_vm0, %v4111_v51 }
  0x6f   : > { %3641 = vmatpush3.bf16.xpose.msk.msra.mxu1 %vm3907_vm1, %v3639_v50  ;;  %3689 = vmatpush3.bf16.xpose.msk.msra.mxu0 %vm3907_vm1, %v3684_v40  ;;  %v4272_v40 = vld [vmem:[%s3952_s28 + $0xd0] sm:$0xff]  ;;  %v4321_v50 = vld [vmem:[%s3952_s28 + $0xf8] sm:$0xff] }
  0x70   : > { %3644 = vmatprep.subr.msk.bf16.mxu1 %vm3907_vm1, %v3642_v52  ;;  %3692 = vmatprep.subr.msk.bf16.mxu0 %vm3907_vm1, %v3690_v53  ;;  %v4339_v52 = vld [vmem:[%s3952_s28 + $0x108] sm:$0xff] }
  0x71   : > { %2979 = vmatmul.mubr.msk.f32.gmra.mrb[10].mxu0 %vm365_vm0, %v178_v36  ;;  %3368 = vmatmul.mubr.msk.f32.gmra.mrb[10].mxu1 %vm365_vm0, %v4120_v54  ;;  %v363_v36 = vld [vmem:[%s3903_s25 + $0x2f0] sm:$0xff] }
  0x72   : > { %2980 = vmatprep.mubr.msk.f32.mxu0 %vm365_vm0, %v179_v38  ;;  %3370 = vmatprep.mubr.msk.f32.mxu1 %vm365_vm0, %v4125_v55 }
  0x75   : > { %2981 = vmatmul.mubr.msk.f32.gmra.mrb[12].mxu0 %vm365_vm0, %v179_v38  ;;  %3371 = vmatmul.mubr.msk.f32.gmra.mrb[12].mxu1 %vm365_vm0, %v4146_v62  ;;  %v4269_v38 = vld [vmem:[%s3952_s28 + $0xc8] sm:$0xff] }
  0x76   : > { %2982 = vmatprep.mubr.msk.f32.mxu0 %vm365_vm0, %v180_v41  ;;  %3373 = vmatprep.mubr.msk.f32.mxu1 %vm365_vm0, %v4149_v1 }
  0x77   : > { %3647 = vmatpush3.bf16.xpose.msk.msra.mxu1 %vm3907_vm1, %v3645_v63  ;;  %3695 = vmatpush3.bf16.xpose.msk.msra.mxu0 %vm3907_vm1, %v3690_v53  ;;  %v4342_v53 = vld [vmem:[%s3952_s28 + $0x110] sm:$0xff]  ;;  %v4423_v63 = vld [vmem:[%s3952_s28 + $0x168] sm:$0xff] }
  0x78   : > { %3650 = vmatprep.subr.msk.bf16.mxu1 %vm3907_vm1, %v3648_v2  ;;  %3698 = vmatprep.subr.msk.bf16.mxu0 %vm3907_vm1, %v3696_v3  ;;  %v4437_v2 = vld [vmem:[%s3952_s28 + $0x178] sm:$0xff] }
  0x79   : > { %2983 = vmatmul.mubr.msk.f32.gmra.mrb[14].mxu0 %vm365_vm0, %v180_v41  ;;  %3374 = vmatmul.mubr.msk.f32.gmra.mrb[14].mxu1 %vm365_vm0, %v4158_v4  ;;  %v3666_v41 = vpack.c.bf16 %v348_v35, %v347_v34  ;;  %v4773_v34 = vld [vmem:[%s3952_s28 + $0x270] sm:$0xff] }
  0x7a   : > { %2984 = vmatprep.mubr.msk.f32.mxu0 %vm365_vm0, %v4088_v42  ;;  %3376 = vmatprep.mubr.msk.f32.mxu1 %vm365_vm0, %v4163_v5 }
  0x7d   : > { %2985 = vmatmul.mubr.msk.f32.gmra.mrb[16].mxu0 %vm365_vm0, %v4088_v42  ;;  %3377 = vmatmul.mubr.msk.f32.gmra.mrb[16].mxu1 %vm365_vm0, %v4185_v12  ;;  %v3714_v42 = vpack.c.bf16 %v364_v37, %v363_v36 }
  0x7e   : > { %2986 = vmatprep.mubr.msk.f32.mxu0 %vm365_vm0, %v4108_v49  ;;  %3379 = vmatprep.mubr.msk.f32.mxu1 %vm365_vm0, %v4188_v14 }
  0x7f   : > { %3653 = vmatpush3.bf16.xpose.msk.msra.mxu1 %vm3907_vm1, %v3651_v13  ;;  %3701 = vmatpush3.bf16.xpose.msk.msra.mxu0 %vm3907_vm1, %v3696_v3  ;;  %v4440_v3 = vld [vmem:[%s3952_s28 + $0x180] sm:$0xff]  ;;  %v4550_v13 = vld [vmem:[%s3952_s28 + $0x1d0] sm:$0xff] }
  0x80   : > { %3656 = vmatprep.subr.msk.bf16.mxu1 %vm3907_vm1, %v3654_v15  ;;  %3704 = vmatprep.subr.msk.bf16.mxu0 %vm3907_vm1, %v3702_v16  ;;  %v4572_v15 = vld [vmem:[%s3952_s28 + $0x1e0] sm:$0xff] }
  0x81   : > { %2987 = vmatmul.mubr.msk.f32.gmra.mrb[18].mxu0 %vm365_vm0, %v4108_v49  ;;  %3380 = vmatmul.mubr.msk.f32.gmra.mrb[18].mxu1 %vm365_vm0, %v4199_v17  ;;  %v4310_v49 = vld [vmem:[%s3952_s28 + $0xf0] sm:$0xff] }
  0x82   : > { %2988 = vmatprep.mubr.msk.f32.mxu0 %vm365_vm0, %v4111_v51  ;;  %3382 = vmatprep.mubr.msk.f32.mxu1 %vm365_vm0, %v4204_v18 }
  0x85   : > { %2989 = vmatmul.mubr.msk.f32.gmra.mrb[20].mxu0 %vm365_vm0, %v4111_v51  ;;  %3383 = vmatmul.mubr.msk.f32.gmra.mrb[20].mxu1 %vm365_vm0, %v4227_v25  ;;  %v4326_v51 = vld [vmem:[%s3952_s28 + $0x100] sm:$0xff] }
  0x86   : > { %2990 = vmatprep.mubr.msk.f32.mxu0 %vm365_vm0, %v4120_v54  ;;  %3385 = vmatprep.mubr.msk.f32.mxu1 %vm365_vm0, %v4230_v27 }
  0x87   : > { %3659 = vmatpush3.bf16.xpose.msk.msra.mxu1 %vm3907_vm1, %v3657_v26  ;;  %3707 = vmatpush3.bf16.xpose.msk.msra.mxu0 %vm3907_vm1, %v3702_v16  ;;  %v4583_v16 = vld [vmem:[%s3952_s28 + $0x1e8] sm:$0xff]  ;;  %v4693_v26 = vld [vmem:[%s3952_s28 + $0x238] sm:$0xff] }
  0x88   : > { %3662 = vmatprep.subr.msk.bf16.mxu1 %vm3907_vm1, %v3660_v28  ;;  %3710 = vmatprep.subr.msk.bf16.mxu0 %vm3907_vm1, %v3708_v29  ;;  %v4715_v28 = vld [vmem:[%s3952_s28 + $0x248] sm:$0xff] }
  0x89   : > { %2991 = vmatmul.mubr.msk.f32.gmra.mrb[22].mxu0 %vm365_vm0, %v4120_v54  ;;  %3386 = vmatmul.mubr.msk.f32.gmra.mrb[22].mxu1 %vm365_vm0, %v4241_v30  ;;  %v4356_v54 = vld [vmem:[%s3952_s28 + $0x120] sm:$0xff] }
  0x8a   : > { %2992 = vmatprep.mubr.msk.f32.mxu0 %vm365_vm0, %v4125_v55  ;;  %3388 = vmatprep.mubr.msk.f32.mxu1 %vm365_vm0, %v4246_v31 }
  0x8d   : > { %2993 = vmatmul.mubr.msk.f32.gmra.mrb[24].mxu0 %vm365_vm0, %v4125_v55  ;;  %3389 = vmatmul.mubr.msk.f32.gmra.mrb[24].mxu1 %vm365_vm0, %v4269_v38  ;;  %v4367_v55 = vld [vmem:[%s3952_s28 + $0x128] sm:$0xff] }
  0x8e   : > { %2994 = vmatprep.mubr.msk.f32.mxu0 %vm365_vm0, %v4146_v62  ;;  %3391 = vmatprep.mubr.msk.f32.mxu1 %vm365_vm0, %v4272_v40 }
  0x8f   : > { %3665 = vmatpush3.bf16.xpose.msk.msra.mxu1 %vm3907_vm1, %v3663_v39  ;;  %3713 = vmatpush3.bf16.xpose.msk.msra.mxu0 %vm3907_vm1, %v3708_v29  ;;  %v4726_v29 = vld [vmem:[%s3952_s28 + $0x250] sm:$0xff]  ;;  %v4790_v39 = vld [vmem:[%s3952_s28 + $0x278] sm:$0xff] }
  0x90   : > { %3668 = vmatprep.subr.msk.bf16.mxu1 %vm3907_vm1, %v3666_v41  ;;  %3716 = vmatprep.subr.msk.bf16.mxu0 %vm3907_vm1, %v3714_v42 }
  0x91   : > { %2995 = vmatmul.mubr.msk.f32.gmra.mrb[26].mxu0 %vm365_vm0, %v4146_v62  ;;  %3392 = vmatmul.mubr.msk.f32.gmra.mrb[26].mxu1 %vm365_vm0, %v4283_v43  ;;  %v4412_v62 = vld [vmem:[%s3952_s28 + $0x160] sm:$0xff] }
  0x92   : > { %2996 = vmatprep.mubr.msk.f32.mxu0 %vm365_vm0, %v4149_v1  ;;  %3394 = vmatprep.mubr.msk.f32.mxu1 %vm365_vm0, %v4288_v44 }
  0x95   : > { %2997 = vmatmul.mubr.msk.f32.gmra.mrb[28].mxu0 %vm365_vm0, %v4149_v1  ;;  %3395 = vmatmul.mubr.msk.f32.gmra.mrb[28].mxu1 %vm365_vm0, %v4307_v47  ;;  %v4426_v1 = vld [vmem:[%s3952_s28 + $0x170] sm:$0xff] }
  0x96   : > { %2998 = vmatprep.mubr.msk.f32.mxu0 %vm365_vm0, %v4158_v4  ;;  %3397 = vmatprep.mubr.msk.f32.mxu1 %vm365_vm0, %v4310_v49 }
  0x97   : > { %3671 = vmatpush3.bf16.xpose.msk.msra.mxu1 %vm3907_vm1, %v3669_v48  ;;  %3719 = vmatpush3.bf16.xpose.msk.msra.mxu0 %vm3907_vm1, %v3714_v42 }
  0x99   : > { %2999 = vmatmul.mubr.msk.f32.gmra.mrb[30].mxu0 %vm365_vm0, %v4158_v4  ;;  %3398 = vmatmul.mubr.msk.f32.gmra.mrb[30].mxu1 %vm365_vm0, %v4321_v50  ;;  %v4451_v4 = vld [vmem:[%s3952_s28 + $0x188] sm:$0xff] }
  0x9a   : > { %3000 = vmatprep.mubr.msk.f32.mxu0 %vm365_vm0, %v4163_v5  ;;  %3400 = vmatprep.mubr.msk.f32.mxu1 %vm365_vm0, %v4326_v51 }
  0x9d   : > { %3001 = vmatmul.mubr.msk.f32.gmra.mrb[32].mxu0 %vm365_vm0, %v4163_v5  ;;  %3401 = vmatmul.mubr.msk.f32.gmra.mrb[32].mxu1 %vm365_vm0, %v4339_v52  ;;  %v4462_v5 = vld [vmem:[%s3952_s28 + $0x190] sm:$0xff] }
  0x9e   : > { %3002 = vmatprep.mubr.msk.f32.mxu0 %vm365_vm0, %v4185_v12  ;;  %3403 = vmatprep.mubr.msk.f32.mxu1 %vm365_vm0, %v4342_v53 }
  0xa1   : > { %3003 = vmatmul.mubr.msk.f32.gmra.mrb[34].mxu0 %vm365_vm0, %v4185_v12  ;;  %3404 = vmatmul.mubr.msk.f32.gmra.mrb[34].mxu1 %vm365_vm0, %v4353_v0  ;;  %v4539_v12 = vld [vmem:[%s3952_s28 + $0x1c8] sm:$0xff] }
  0xa2   : > { %3004 = vmatprep.mubr.msk.f32.mxu0 %vm365_vm0, %v4188_v14  ;;  %3406 = vmatprep.mubr.msk.f32.mxu1 %vm365_vm0, %v4356_v54 }
  0xa5   : > { %3005 = vmatmul.mubr.msk.f32.gmra.mrb[36].mxu0 %vm365_vm0, %v4188_v14  ;;  %3407 = vmatmul.mubr.msk.f32.gmra.mrb[36].mxu1 %vm365_vm0, %v4367_v55  ;;  %v4561_v14 = vld [vmem:[%s3952_s28 + $0x1d8] sm:$0xff] }
  0xa6   : > { %3006 = vmatprep.mubr.msk.f32.mxu0 %vm365_vm0, %v4199_v17  ;;  %3409 = vmatprep.mubr.msk.f32.mxu1 %vm365_vm0, %v4370_v56 }
  0xa9   : > { %3007 = vmatmul.mubr.msk.f32.gmra.mrb[38].mxu0 %vm365_vm0, %v4199_v17  ;;  %3410 = vmatmul.mubr.msk.f32.gmra.mrb[38].mxu1 %vm365_vm0, %v4381_v57  ;;  %v4594_v17 = vld [vmem:[%s3952_s28 + $0x1f0] sm:$0xff] }
  0xaa   : > { %3008 = vmatprep.mubr.msk.f32.mxu0 %vm365_vm0, %v4204_v18  ;;  %3412 = vmatprep.mubr.msk.f32.mxu1 %vm365_vm0, %v4384_v58 }
  0xad   : > { %3009 = vmatmul.mubr.msk.f32.gmra.mrb[40].mxu0 %vm365_vm0, %v4204_v18  ;;  %3413 = vmatmul.mubr.msk.f32.gmra.mrb[40].mxu1 %vm365_vm0, %v4395_v59  ;;  %v4605_v18 = vld [vmem:[%s3952_s28 + $0x1f8] sm:$0xff] }
  0xae   : > { %3010 = vmatprep.mubr.msk.f32.mxu0 %vm365_vm0, %v4227_v25  ;;  %3415 = vmatprep.mubr.msk.f32.mxu1 %vm365_vm0, %v4398_v60 }
  0xb1   : > { %3011 = vmatmul.mubr.msk.f32.gmra.mrb[42].mxu0 %vm365_vm0, %v4227_v25  ;;  %3416 = vmatmul.mubr.msk.f32.gmra.mrb[42].mxu1 %vm365_vm0, %v4409_v61  ;;  %v4682_v25 = vld [vmem:[%s3952_s28 + $0x230] sm:$0xff] }
  0xb2   : > { %3012 = vmatprep.mubr.msk.f32.mxu0 %vm365_vm0, %v4230_v27  ;;  %3418 = vmatprep.mubr.msk.f32.mxu1 %vm365_vm0, %v4412_v62 }
  0xb5   : > { %3013 = vmatmul.mubr.msk.f32.gmra.mrb[44].mxu0 %vm365_vm0, %v4230_v27  ;;  %3419 = vmatmul.mubr.msk.f32.gmra.mrb[44].mxu1 %vm365_vm0, %v4423_v63  ;;  %v4704_v27 = vld [vmem:[%s3952_s28 + $0x240] sm:$0xff] }
  0xb6   : > { %3014 = vmatprep.mubr.msk.f32.mxu0 %vm365_vm0, %v4241_v30  ;;  %3421 = vmatprep.mubr.msk.f32.mxu1 %vm365_vm0, %v4426_v1 }
  0xb9   : > { %3015 = vmatmul.mubr.msk.f32.gmra.mrb[46].mxu0 %vm365_vm0, %v4241_v30  ;;  %3422 = vmatmul.mubr.msk.f32.gmra.mrb[46].mxu1 %vm365_vm0, %v4437_v2  ;;  %v4737_v30 = vld [vmem:[%s3952_s28 + $0x258] sm:$0xff] }
  0xba   : > { %3016 = vmatprep.mubr.msk.f32.mxu0 %vm365_vm0, %v4246_v31  ;;  %3160 = vmatprep.mubr.msk.f32.mxu1 %vm365_vm0, %v4440_v3 }
  0xbd   : > { %3017 = vmatmul.mubr.msk.f32.gmra.mrb[48].mxu0 %vm365_vm0, %v4246_v31  ;;  %3161 = vmatmul.mubr.msk.f32.vlgmr.msra.gmra.mrb[48].mxu1 %vm365_vm0, %v4440_v3  ;;  %v4749_v31 = vld [vmem:[%s3952_s28 + $0x260] sm:$0xff] }
  0xbe   : > { %3018 = vmatprep.mubr.msk.f32.mxu0 %vm365_vm0, %v4269_v38  ;;  %3162 = vmatprep.mubr.msk.f32.mxu1 %vm365_vm0, %v4451_v4 }
  0xc1   : > { %3019 = vmatmul.mubr.msk.f32.gmra.mrb[50].mxu0 %vm365_vm0, %v4269_v38  ;;  %3163 = vmatmul.mubr.msk.f32.gmra.mrb[50].mxu1 %vm365_vm0, %v4451_v4 }
  0xc2   : > { %3020 = vmatprep.mubr.msk.f32.mxu0 %vm365_vm0, %v4272_v40  ;;  %3164 = vmatprep.mubr.msk.f32.mxu1 %vm365_vm0, %v4462_v5 }
  0xc5   : > { %3021 = vmatmul.mubr.msk.f32.gmra.mrb[52].mxu0 %vm365_vm0, %v4272_v40  ;;  %3165 = vmatmul.mubr.msk.f32.gmra.mrb[52].mxu1 %vm365_vm0, %v4462_v5 }
  0xc6   : > { %3022 = vmatprep.mubr.msk.f32.mxu0 %vm365_vm0, %v4283_v43  ;;  %3166 = vmatprep.mubr.msk.f32.mxu1 %vm365_vm0, %v4473_v6 }
  0xc9   : > { %3023 = vmatmul.mubr.msk.f32.gmra.mrb[54].mxu0 %vm365_vm0, %v4283_v43  ;;  %3167 = vmatmul.mubr.msk.f32.gmra.mrb[54].mxu1 %vm365_vm0, %v4473_v6 }
  0xca   : > { %3024 = vmatprep.mubr.msk.f32.mxu0 %vm365_vm0, %v4288_v44  ;;  %3168 = vmatprep.mubr.msk.f32.mxu1 %vm365_vm0, %v4484_v7 }
  0xcd   : > { %3025 = vmatmul.mubr.msk.f32.gmra.mrb[56].mxu0 %vm365_vm0, %v4288_v44  ;;  %3169 = vmatmul.mubr.msk.f32.gmra.mrb[56].mxu1 %vm365_vm0, %v4484_v7  ;;  %v4805_v44 = vld [vmem:[%s3952_s28 + $0x280] sm:$0xff] }
  0xce   : > { %3026 = vmatprep.mubr.msk.f32.mxu0 %vm365_vm0, %v4307_v47  ;;  %3170 = vmatprep.mubr.msk.f32.mxu1 %vm365_vm0, %v4495_v8 }
  0xd1   : > { %3027 = vmatmul.mubr.msk.f32.gmra.mrb[58].mxu0 %vm365_vm0, %v4307_v47  ;;  %3171 = vmatmul.mubr.msk.f32.gmra.mrb[58].mxu1 %vm365_vm0, %v4495_v8 }
  0xd2   : > { %3028 = vmatprep.mubr.msk.f32.mxu0 %vm365_vm0, %v4310_v49  ;;  %3172 = vmatprep.mubr.msk.f32.mxu1 %vm365_vm0, %v4506_v9 }
  0xd5   : > { %3029 = vmatmul.mubr.msk.f32.gmra.mrb[60].mxu0 %vm365_vm0, %v4310_v49  ;;  %3173 = vmatmul.mubr.msk.f32.gmra.mrb[60].mxu1 %vm365_vm0, %v4506_v9  ;;  %v4820_v49 = vld [vmem:[%s3952_s28 + $0x288] sm:$0xff] }
  0xd6   : > { %3030 = vmatprep.mubr.msk.f32.mxu0 %vm365_vm0, %v4321_v50  ;;  %3174 = vmatprep.mubr.msk.f32.mxu1 %vm365_vm0, %v4517_v10 }
  0xd9   : > { %3031 = vmatmul.mubr.msk.f32.gmra.mrb[62].mxu0 %vm365_vm0, %v4321_v50  ;;  %3175 = vmatmul.mubr.msk.f32.gmra.mrb[62].mxu1 %vm365_vm0, %v4517_v10 }
  0xda   : > { %3032 = vmatprep.mubr.msk.f32.mxu0 %vm365_vm0, %v4326_v51  ;;  %3176 = vmatprep.mubr.msk.f32.mxu1 %vm365_vm0, %v4528_v11 }
  0xdd   : > { %3033 = vmatmul.mubr.msk.f32.gmra.mrb[64].mxu0 %vm365_vm0, %v4326_v51  ;;  %3177 = vmatmul.mubr.msk.f32.gmra.mrb[64].mxu1 %vm365_vm0, %v4528_v11 }
  0xde   : > { %3034 = vmatprep.mubr.msk.f32.mxu0 %vm365_vm0, %v4339_v52  ;;  %3178 = vmatprep.mubr.msk.f32.mxu1 %vm365_vm0, %v4539_v12 }
  0xe1   : > { %3035 = vmatmul.mubr.msk.f32.gmra.mrb[66].mxu0 %vm365_vm0, %v4339_v52  ;;  %3179 = vmatmul.mubr.msk.f32.gmra.mrb[66].mxu1 %vm365_vm0, %v4539_v12 }
  0xe2   : > { %3036 = vmatprep.mubr.msk.f32.mxu0 %vm365_vm0, %v4342_v53  ;;  %3180 = vmatprep.mubr.msk.f32.mxu1 %vm365_vm0, %v4550_v13 }
  0xe5   : > { %3037 = vmatmul.mubr.msk.f32.gmra.mrb[68].mxu0 %vm365_vm0, %v4342_v53  ;;  %3181 = vmatmul.mubr.msk.f32.gmra.mrb[68].mxu1 %vm365_vm0, %v4550_v13 }
  0xe6   : > { %3038 = vmatprep.mubr.msk.f32.mxu0 %vm365_vm0, %v4353_v0  ;;  %3182 = vmatprep.mubr.msk.f32.mxu1 %vm365_vm0, %v4561_v14 }
  0xe9   : > { %3039 = vmatmul.mubr.msk.f32.gmra.mrb[70].mxu0 %vm365_vm0, %v4353_v0  ;;  %3183 = vmatmul.mubr.msk.f32.gmra.mrb[70].mxu1 %vm365_vm0, %v4561_v14  ;;  %v4835_v0 = vld [vmem:[%s3952_s28 + $0x290] sm:$0xff] }
  0xea   : > { %3040 = vmatprep.mubr.msk.f32.mxu0 %vm365_vm0, %v4356_v54  ;;  %3184 = vmatprep.mubr.msk.f32.mxu1 %vm365_vm0, %v4572_v15 }
  0xed   : > { %3041 = vmatmul.mubr.msk.f32.gmra.mrb[72].mxu0 %vm365_vm0, %v4356_v54  ;;  %3185 = vmatmul.mubr.msk.f32.gmra.mrb[72].mxu1 %vm365_vm0, %v4572_v15 }
  0xee   : > { %3042 = vmatprep.mubr.msk.f32.mxu0 %vm365_vm0, %v4367_v55  ;;  %3186 = vmatprep.mubr.msk.f32.mxu1 %vm365_vm0, %v4583_v16 }
  0xf1   : > { %3043 = vmatmul.mubr.msk.f32.gmra.mrb[74].mxu0 %vm365_vm0, %v4367_v55  ;;  %3187 = vmatmul.mubr.msk.f32.gmra.mrb[74].mxu1 %vm365_vm0, %v4583_v16 }
  0xf2   : > { %3044 = vmatprep.mubr.msk.f32.mxu0 %vm365_vm0, %v4370_v56  ;;  %3188 = vmatprep.mubr.msk.f32.mxu1 %vm365_vm0, %v4594_v17 }
  0xf5   : > { %3045 = vmatmul.mubr.msk.f32.gmra.mrb[76].mxu0 %vm365_vm0, %v4370_v56  ;;  %3189 = vmatmul.mubr.msk.f32.gmra.mrb[76].mxu1 %vm365_vm0, %v4594_v17 }
  0xf6   : > { %3046 = vmatprep.mubr.msk.f32.mxu0 %vm365_vm0, %v4381_v57  ;;  %3190 = vmatprep.mubr.msk.f32.mxu1 %vm365_vm0, %v4605_v18 }
  0xf9   : > { %3047 = vmatmul.mubr.msk.f32.gmra.mrb[78].mxu0 %vm365_vm0, %v4381_v57  ;;  %3191 = vmatmul.mubr.msk.f32.gmra.mrb[78].mxu1 %vm365_vm0, %v4605_v18 }
  0xfa   : > { %3048 = vmatprep.mubr.msk.f32.mxu0 %vm365_vm0, %v4384_v58  ;;  %3192 = vmatprep.mubr.msk.f32.mxu1 %vm365_vm0, %v4616_v19 }
  0xfd   : > { %3049 = vmatmul.mubr.msk.f32.gmra.mrb[80].mxu0 %vm365_vm0, %v4384_v58  ;;  %3193 = vmatmul.mubr.msk.f32.gmra.mrb[80].mxu1 %vm365_vm0, %v4616_v19  ;;  %v4850_v58 = vld [vmem:[%s3952_s28 + $0x298] sm:$0xff] }
  0xfe   : > { %3050 = vmatprep.mubr.msk.f32.mxu0 %vm365_vm0, %v4395_v59  ;;  %3194 = vmatprep.mubr.msk.f32.mxu1 %vm365_vm0, %v4627_v20 }
 0x101   : > { %3051 = vmatmul.mubr.msk.f32.gmra.mrb[82].mxu0 %vm365_vm0, %v4395_v59  ;;  %3195 = vmatmul.mubr.msk.f32.gmra.mrb[82].mxu1 %vm365_vm0, %v4627_v20 }
 0x102   : > { %3052 = vmatprep.mubr.msk.f32.mxu0 %vm365_vm0, %v4398_v60  ;;  %3196 = vmatprep.mubr.msk.f32.mxu1 %vm365_vm0, %v4638_v21 }
 0x105   : > { %3053 = vmatmul.mubr.msk.f32.gmra.mrb[84].mxu0 %vm365_vm0, %v4398_v60  ;;  %3197 = vmatmul.mubr.msk.f32.gmra.mrb[84].mxu1 %vm365_vm0, %v4638_v21 }
 0x106   : > { %3054 = vmatprep.mubr.msk.f32.mxu0 %vm365_vm0, %v4409_v61  ;;  %3198 = vmatprep.mubr.msk.f32.mxu1 %vm365_vm0, %v4649_v22 }
 0x109   : > { %3055 = vmatmul.mubr.msk.f32.gmra.mrb[86].mxu0 %vm365_vm0, %v4409_v61  ;;  %3199 = vmatmul.mubr.msk.f32.gmra.mrb[86].mxu1 %vm365_vm0, %v4649_v22 }
 0x10a   : > { %3056 = vmatprep.mubr.msk.f32.mxu0 %vm365_vm0, %v4412_v62  ;;  %3200 = vmatprep.mubr.msk.f32.mxu1 %vm365_vm0, %v4660_v23 }
 0x10d   : > { %3057 = vmatmul.mubr.msk.f32.gmra.mrb[88].mxu0 %vm365_vm0, %v4412_v62  ;;  %3201 = vmatmul.mubr.msk.f32.gmra.mrb[88].mxu1 %vm365_vm0, %v4660_v23 }
 0x10e   : > { %3058 = vmatprep.mubr.msk.f32.mxu0 %vm365_vm0, %v4423_v63  ;;  %3202 = vmatprep.mubr.msk.f32.mxu1 %vm365_vm0, %v4671_v24 }
 0x111   : > { %3059 = vmatmul.mubr.msk.f32.gmra.mrb[90].mxu0 %vm365_vm0, %v4423_v63  ;;  %3203 = vmatmul.mubr.msk.f32.gmra.mrb[90].mxu1 %vm365_vm0, %v4671_v24  ;;  %v4865_v63 = vld [vmem:[%s3952_s28 + $0x2a0] sm:$0xff] }
 0x112   : > { %3060 = vmatprep.mubr.msk.f32.mxu0 %vm365_vm0, %v4426_v1  ;;  %3204 = vmatprep.mubr.msk.f32.mxu1 %vm365_vm0, %v4682_v25 }
 0x115   : > { %3061 = vmatmul.mubr.msk.f32.gmra.mrb[92].mxu0 %vm365_vm0, %v4426_v1  ;;  %3205 = vmatmul.mubr.msk.f32.gmra.mrb[92].mxu1 %vm365_vm0, %v4682_v25 }
 0x116   : > { %3062 = vmatprep.mubr.msk.f32.mxu0 %vm365_vm0, %v4437_v2  ;;  %3206 = vmatprep.mubr.msk.f32.mxu1 %vm365_vm0, %v4693_v26 }
 0x119   : > { %3063 = vmatmul.mubr.msk.f32.gmra.mrb[94].mxu0 %vm365_vm0, %v4437_v2  ;;  %3207 = vmatmul.mubr.msk.f32.gmra.mrb[94].mxu1 %vm365_vm0, %v4693_v26 }
 0x11a   : > { %3456 = vmatprep.mubr.msk.f32.mxu0 %vm365_vm0, %v4440_v3  ;;  %3208 = vmatprep.mubr.msk.f32.mxu1 %vm365_vm0, %v4704_v27 }
 0x11d   : > { %3457 = vmatmul.mubr.msk.f32.vlgmr.msra.gmra.mrb[96].mxu0 %vm365_vm0, %v4451_v4  ;;  %3209 = vmatmul.mubr.msk.f32.gmra.mrb[96].mxu1 %vm365_vm0, %v4704_v27 }
 0x11e   : > { %3459 = vmatprep.mubr.msk.f32.mxu0 %vm365_vm0, %v4462_v5  ;;  %3210 = vmatprep.mubr.msk.f32.mxu1 %vm365_vm0, %v4715_v28  ;;  %v4880_v5 = vld [vmem:[%s3952_s28 + $0x2a8] sm:$0xff] }
 0x121   : > { %3460 = vmatmul.mubr.msk.f32.gmra.mrb[98].mxu0 %vm365_vm0, %v4473_v6  ;;  %3211 = vmatmul.mubr.msk.f32.gmra.mrb[98].mxu1 %vm365_vm0, %v4715_v28 }
 0x122   : > { %3462 = vmatprep.mubr.msk.f32.mxu0 %vm365_vm0, %v4484_v7  ;;  %3212 = vmatprep.mubr.msk.f32.mxu1 %vm365_vm0, %v4726_v29 }
 0x125   : > { %3463 = vmatmul.mubr.msk.f32.gmra.mrb[100].mxu0 %vm365_vm0, %v4495_v8  ;;  %3213 = vmatmul.mubr.msk.f32.gmra.mrb[100].mxu1 %vm365_vm0, %v4726_v29 }
 0x126   : > { %3465 = vmatprep.mubr.msk.f32.mxu0 %vm365_vm0, %v4506_v9  ;;  %3214 = vmatprep.mubr.msk.f32.mxu1 %vm365_vm0, %v4737_v30 }
 0x129   : > { %3466 = vmatmul.mubr.msk.f32.gmra.mrb[102].mxu0 %vm365_vm0, %v4517_v10  ;;  %3215 = vmatmul.mubr.msk.f32.gmra.mrb[102].mxu1 %vm365_vm0, %v4737_v30  ;;  %v4895_v10 = vld [vmem:[%s3952_s28 + $0x2b0] sm:$0xff] }
 0x12a   : > { %3468 = vmatprep.mubr.msk.f32.mxu0 %vm365_vm0, %v4528_v11  ;;  %3216 = vmatprep.mubr.msk.f32.mxu1 %vm365_vm0, %v4749_v31 }
 0x12d   : > { %3469 = vmatmul.mubr.msk.f32.gmra.mrb[104].mxu0 %vm365_vm0, %v4539_v12  ;;  %3217 = vmatmul.mubr.msk.f32.gmra.mrb[104].mxu1 %vm365_vm0, %v4749_v31 }
 0x12e   : > { %3471 = vmatprep.mubr.msk.f32.mxu0 %vm365_vm0, %v4550_v13  ;;  %3218 = vmatprep.mubr.msk.f32.mxu1 %vm365_vm0, %v4762_v32 }
 0x130   : > { %v720_v33 = vpop.f32.mrb[0].mxu0  ;;  %v3354_v35 = vpop.f32.mrb[0].mxu1 }
 0x131   : > { %2258 = vst [vmem:[%s4775_s3] sm:$0xff] %v720_v33  ;;  %v722_v36 = vpop.f32.mrb[1].mxu0  ;;  %3472 = vmatmul.mubr.msk.f32.gmra.mrb[106].mxu0 %vm365_vm0, %v4561_v14  ;;  %2263 = vst [vmem:[%s4775_s3 + $0x28] sm:$0xff] %v3354_v35  ;;  %v1073_v37 = vpop.f32.mrb[1].mxu1  ;;  %3219 = vmatmul.mubr.msk.f32.gmra.mrb[106].mxu1 %vm365_vm0, %v4762_v32  ;;  %v264_v35 = vld [vmem:[%s3952_s28 + $0x2d8] sm:$0xff] }
 0x132   : > { %2259 = vst [vmem:[%s4775_s3 + $0x8] sm:$0xff] %v722_v36  ;;  %3474 = vmatprep.mubr.msk.f32.mxu0 %vm365_vm0, %v4572_v15  ;;  %2260 = vst [vmem:[%s4775_s3 + $0x10] sm:$0xff] %v1073_v37  ;;  %3220 = vmatprep.mubr.msk.f32.mxu1 %vm365_vm0, %v4773_v34  ;;  %v4910_v15 = vld [vmem:[%s3952_s28 + $0x2b8] sm:$0xff] }
 0x134   : > { %v726_v38 = vpop.f32.mrb[2].mxu0  ;;  %v3357_v40 = vpop.f32.mrb[2].mxu1 }
 0x135   : > { %2261 = vst [vmem:[%s4775_s3 + $0x18] sm:$0xff] %v726_v38  ;;  %v728_v41 = vpop.f32.mrb[3].mxu0  ;;  %3475 = vmatmul.mubr.msk.f32.gmra.mrb[108].mxu0 %vm365_vm0, %v4583_v16  ;;  %2269 = vst [vmem:[%s4775_s3 + $0x58] sm:$0xff] %v3357_v40  ;;  %v1083_v42 = vpop.f32.mrb[3].mxu1  ;;  %3221 = vmatmul.mubr.msk.f32.gmra.mrb[108].mxu1 %vm365_vm0, %v4773_v34  ;;  %v265_v40 = vld [vmem:[%s3952_s28 + $0x2e0] sm:$0xff] }
 0x136   : > { %2262 = vst [vmem:[%s4775_s3 + $0x20] sm:$0xff] %v728_v41  ;;  %3477 = vmatprep.mubr.msk.f32.mxu0 %vm365_vm0, %v4594_v17  ;;  %2266 = vst [vmem:[%s4775_s3 + $0x40] sm:$0xff] %v1083_v42  ;;  %3222 = vmatprep.mubr.msk.f32.mxu1 %vm365_vm0, %v4790_v39 }
 0x138   : > { %v732_v43 = vpop.f32.mrb[4].mxu0  ;;  %v3360_v45 = vpop.f32.mrb[4].mxu1 }
 0x139   : > { %2264 = vst [vmem:[%s4775_s3 + $0x30] sm:$0xff] %v732_v43  ;;  %v734_v46 = vpop.f32.mrb[5].mxu0  ;;  %3478 = vmatmul.mubr.msk.f32.gmra.mrb[110].mxu0 %vm365_vm0, %v4605_v18  ;;  %2275 = vst [vmem:[%s4775_s3 + $0x88] sm:$0xff] %v3360_v45  ;;  %v1093_v47 = vpop.f32.mrb[5].mxu1  ;;  %3223 = vmatmul.mubr.msk.f32.gmra.mrb[110].mxu1 %vm365_vm0, %v4790_v39  ;;  %v266_v45 = vld [vmem:[%s3952_s28 + $0x2e8] sm:$0xff] }
 0x13a   : > { %2265 = vst [vmem:[%s4775_s3 + $0x38] sm:$0xff] %v734_v46  ;;  %3480 = vmatprep.mubr.msk.f32.mxu0 %vm365_vm0, %v4616_v19  ;;  %2272 = vst [vmem:[%s4775_s3 + $0x70] sm:$0xff] %v1093_v47  ;;  %3224 = vmatprep.mubr.msk.f32.mxu1 %vm365_vm0, %v4805_v44 }
 0x13c   : > { %v738_v48 = vpop.f32.mrb[6].mxu0  ;;  %v3363_v50 = vpop.f32.mrb[6].mxu1 }
 0x13d   : > { %2267 = vst [vmem:[%s4775_s3 + $0x48] sm:$0xff] %v738_v48  ;;  %v740_v51 = vpop.f32.mrb[7].mxu0  ;;  %3481 = vmatmul.mubr.msk.f32.gmra.mrb[112].mxu0 %vm365_vm0, %v4627_v20  ;;  %2281 = vst [vmem:[%s4775_s3 + $0xb8] sm:$0xff] %v3363_v50  ;;  %v1103_v52 = vpop.f32.mrb[7].mxu1  ;;  %3225 = vmatmul.mubr.msk.f32.gmra.mrb[112].mxu1 %vm365_vm0, %v4805_v44  ;;  %v261_v20 = vld [vmem:[%s3952_s28 + $0x2c0] sm:$0xff]  ;;  %v267_v50 = vld [vmem:[%s3952_s28 + $0x2f0] sm:$0xff] }
 0x13e   : > { %2268 = vst [vmem:[%s4775_s3 + $0x50] sm:$0xff] %v740_v51  ;;  %3483 = vmatprep.mubr.msk.f32.mxu0 %vm365_vm0, %v4638_v21  ;;  %2278 = vst [vmem:[%s4775_s3 + $0xa0] sm:$0xff] %v1103_v52  ;;  %3226 = vmatprep.mubr.msk.f32.mxu1 %vm365_vm0, %v4820_v49 }
 0x140   : > { %v744_v53 = vpop.f32.mrb[8].mxu0  ;;  %v3366_v54 = vpop.f32.mrb[8].mxu1 }
 0x141   : > { %2270 = vst [vmem:[%s4775_s3 + $0x60] sm:$0xff] %v744_v53  ;;  %v746_v55 = vpop.f32.mrb[9].mxu0  ;;  %3484 = vmatmul.mubr.msk.f32.gmra.mrb[114].mxu0 %vm365_vm0, %v4649_v22  ;;  %2287 = vst [vmem:[%s4775_s3 + $0xe8] sm:$0xff] %v3366_v54  ;;  %v1113_v56 = vpop.f32.mrb[9].mxu1  ;;  %3227 = vmatmul.mubr.msk.f32.gmra.mrb[114].mxu1 %vm365_vm0, %v4820_v49  ;;  %v268_v54 = vld [vmem:[%s3952_s28 + $0x2f8] sm:$0xff] }
 0x142   : > { %2271 = vst [vmem:[%s4775_s3 + $0x68] sm:$0xff] %v746_v55  ;;  %3486 = vmatprep.mubr.msk.f32.mxu0 %vm365_vm0, %v4660_v23  ;;  %2284 = vst [vmem:[%s4775_s3 + $0xd0] sm:$0xff] %v1113_v56  ;;  %3228 = vmatprep.mubr.msk.f32.mxu1 %vm365_vm0, %v4835_v0 }
 0x144   : > { %v750_v57 = vpop.f32.mrb[10].mxu0  ;;  %v3369_v59 = vpop.f32.mrb[10].mxu1 }
 0x145   : > { %2273 = vst [vmem:[%s4775_s3 + $0x78] sm:$0xff] %v750_v57  ;;  %v752_v60 = vpop.f32.mrb[11].mxu0  ;;  %3487 = vmatmul.mubr.msk.f32.gmra.mrb[116].mxu0 %vm365_vm0, %v4671_v24  ;;  %2293 = vst [vmem:[%s4775_s3 + $0x118] sm:$0xff] %v3369_v59  ;;  %v1123_v61 = vpop.f32.mrb[11].mxu1  ;;  %3229 = vmatmul.mubr.msk.f32.gmra.mrb[116].mxu1 %vm365_vm0, %v4835_v0 }
 0x146   : > { %2274 = vst [vmem:[%s4775_s3 + $0x80] sm:$0xff] %v752_v60  ;;  %3489 = vmatprep.mubr.msk.f32.mxu0 %vm365_vm0, %v4682_v25  ;;  %2290 = vst [vmem:[%s4775_s3 + $0x100] sm:$0xff] %v1123_v61  ;;  %3230 = vmatprep.mubr.msk.f32.mxu1 %vm365_vm0, %v4850_v58  ;;  %v262_v25 = vld [vmem:[%s3952_s28 + $0x2c8] sm:$0xff] }
 0x148   : > { %v756_v62 = vpop.f32.mrb[12].mxu0  ;;  %v3372_v1 = vpop.f32.mrb[12].mxu1 }
 0x149   : > { %2276 = vst [vmem:[%s4775_s3 + $0x90] sm:$0xff] %v756_v62  ;;  %v758_v2 = vpop.f32.mrb[13].mxu0  ;;  %3490 = vmatmul.mubr.msk.f32.gmra.mrb[118].mxu0 %vm365_vm0, %v4693_v26  ;;  %2299 = vst [vmem:[%s4775_s3 + $0x148] sm:$0xff] %v3372_v1  ;;  %v1133_v3 = vpop.f32.mrb[13].mxu1  ;;  %3231 = vmatmul.mubr.msk.f32.gmra.mrb[118].mxu1 %vm365_vm0, %v4850_v58 }
 0x14a   : > { %2277 = vst [vmem:[%s4775_s3 + $0x98] sm:$0xff] %v758_v2  ;;  %3492 = vmatprep.mubr.msk.f32.mxu0 %vm365_vm0, %v4704_v27  ;;  %2296 = vst [vmem:[%s4775_s3 + $0x130] sm:$0xff] %v1133_v3  ;;  %3232 = vmatprep.mubr.msk.f32.mxu1 %vm365_vm0, %v4865_v63 }
 0x14c   : > { %v762_v4 = vpop.f32.mrb[14].mxu0  ;;  %v3375_v6 = vpop.f32.mrb[14].mxu1 }
 0x14d   : > { %2279 = vst [vmem:[%s4775_s3 + $0xa8] sm:$0xff] %v762_v4  ;;  %v764_v7 = vpop.f32.mrb[15].mxu0  ;;  %3493 = vmatmul.mubr.msk.f32.gmra.mrb[120].mxu0 %vm365_vm0, %v4715_v28  ;;  %2305 = vst [vmem:[%s4775_s3 + $0x178] sm:$0xff] %v3375_v6  ;;  %v1143_v8 = vpop.f32.mrb[15].mxu1  ;;  %3233 = vmatmul.mubr.msk.f32.gmra.mrb[120].mxu1 %vm365_vm0, %v4865_v63 }
 0x14e   : > { %2280 = vst [vmem:[%s4775_s3 + $0xb0] sm:$0xff] %v764_v7  ;;  %3495 = vmatprep.mubr.msk.f32.mxu0 %vm365_vm0, %v4726_v29  ;;  %2302 = vst [vmem:[%s4775_s3 + $0x160] sm:$0xff] %v1143_v8  ;;  %3234 = vmatprep.mubr.msk.f32.mxu1 %vm365_vm0, %v4880_v5 }
 0x150   : > { %v768_v9 = vpop.f32.mrb[16].mxu0  ;;  %v3378_v11 = vpop.f32.mrb[16].mxu1 }
 0x151   : > { %2282 = vst [vmem:[%s4775_s3 + $0xc0] sm:$0xff] %v768_v9  ;;  %v770_v12 = vpop.f32.mrb[17].mxu0  ;;  %3496 = vmatmul.mubr.msk.f32.gmra.mrb[122].mxu0 %vm365_vm0, %v4737_v30  ;;  %2311 = vst [vmem:[%s4775_s3 + $0x1a8] sm:$0xff] %v3378_v11  ;;  %v1153_v13 = vpop.f32.mrb[17].mxu1  ;;  %3235 = vmatmul.mubr.msk.f32.gmra.mrb[122].mxu1 %vm365_vm0, %v4880_v5  ;;  %v263_v30 = vld [vmem:[%s3952_s28 + $0x2d0] sm:$0xff] }
 0x152   : > { %2283 = vst [vmem:[%s4775_s3 + $0xc8] sm:$0xff] %v770_v12  ;;  %3498 = vmatprep.mubr.msk.f32.mxu0 %vm365_vm0, %v4749_v31  ;;  %2308 = vst [vmem:[%s4775_s3 + $0x190] sm:$0xff] %v1153_v13  ;;  %3236 = vmatprep.mubr.msk.f32.mxu1 %vm365_vm0, %v4895_v10 }
 0x154   : > { %v774_v14 = vpop.f32.mrb[18].mxu0  ;;  %v3381_v16 = vpop.f32.mrb[18].mxu1 }
 0x155   : > { %2285 = vst [vmem:[%s4775_s3 + $0xd8] sm:$0xff] %v774_v14  ;;  %v776_v17 = vpop.f32.mrb[19].mxu0  ;;  %3499 = vmatmul.mubr.msk.f32.gmra.mrb[124].mxu0 %vm365_vm0, %v4762_v32  ;;  %2317 = vst [vmem:[%s4775_s3 + $0x1d8] sm:$0xff] %v3381_v16  ;;  %v1163_v18 = vpop.f32.mrb[19].mxu1  ;;  %3237 = vmatmul.mubr.msk.f32.gmra.mrb[124].mxu1 %vm365_vm0, %v4895_v10 }
 0x156   : > { %2286 = vst [vmem:[%s4775_s3 + $0xe0] sm:$0xff] %v776_v17  ;;  %3501 = vmatprep.mubr.msk.f32.mxu0 %vm365_vm0, %v4773_v34  ;;  %2314 = vst [vmem:[%s4775_s3 + $0x1c0] sm:$0xff] %v1163_v18  ;;  %3238 = vmatprep.mubr.msk.f32.mxu1 %vm365_vm0, %v4910_v15 }
 0x158   : > { %v780_v19 = vpop.f32.mrb[20].mxu0  ;;  %v3384_v21 = vpop.f32.mrb[20].mxu1 }
 0x159   : > { %2288 = vst [vmem:[%s4775_s3 + $0xf0] sm:$0xff] %v780_v19  ;;  %v782_v22 = vpop.f32.mrb[21].mxu0  ;;  %3502 = vmatmul.mubr.msk.f32.gmra.mrb[126].mxu0 %vm365_vm0, %v4790_v39  ;;  %2323 = vst [vmem:[%s4775_s3 + $0x208] sm:$0xff] %v3384_v21  ;;  %v1173_v23 = vpop.f32.mrb[21].mxu1  ;;  %3239 = vmatmul.mubr.msk.f32.gmra.mrb[126].mxu1 %vm365_vm0, %v4910_v15 }
 0x15a   : > { %2289 = vst [vmem:[%s4775_s3 + $0xf8] sm:$0xff] %v782_v22  ;;  %3504 = vmatprep.mubr.msk.f32.mxu0 %vm365_vm0, %v4805_v44  ;;  %2320 = vst [vmem:[%s4775_s3 + $0x1f0] sm:$0xff] %v1173_v23  ;;  %3240 = vmatprep.mubr.msk.f32.mxu1 %vm365_vm0, %v261_v20 }
 0x15c   : > { %v786_v24 = vpop.f32.mrb[22].mxu0  ;;  %v3387_v26 = vpop.f32.mrb[22].mxu1 }
 0x15d   : > { %2291 = vst [vmem:[%s4775_s3 + $0x108] sm:$0xff] %v786_v24  ;;  %v788_v27 = vpop.f32.mrb[23].mxu0  ;;  %3505 = vmatmul.mubr.msk.f32.gmra.mrb[128].mxu0 %vm365_vm0, %v4820_v49  ;;  %2329 = vst [vmem:[%s4775_s3 + $0x238] sm:$0xff] %v3387_v26  ;;  %v1183_v28 = vpop.f32.mrb[23].mxu1  ;;  %3241 = vmatmul.mubr.msk.f32.gmra.mrb[128].mxu1 %vm365_vm0, %v261_v20 }
 0x15e   : > { %2292 = vst [vmem:[%s4775_s3 + $0x110] sm:$0xff] %v788_v27  ;;  %3507 = vmatprep.mubr.msk.f32.mxu0 %vm365_vm0, %v4835_v0  ;;  %2326 = vst [vmem:[%s4775_s3 + $0x220] sm:$0xff] %v1183_v28  ;;  %3242 = vmatprep.mubr.msk.f32.mxu1 %vm365_vm0, %v262_v25 }
 0x160   : > { %v792_v29 = vpop.f32.mrb[24].mxu0  ;;  %v3390_v31 = vpop.f32.mrb[24].mxu1 }
 0x161   : > { %2294 = vst [vmem:[%s4775_s3 + $0x120] sm:$0xff] %v792_v29  ;;  %v794_v32 = vpop.f32.mrb[25].mxu0  ;;  %3508 = vmatmul.mubr.msk.f32.gmra.mrb[130].mxu0 %vm365_vm0, %v4850_v58  ;;  %2335 = vst [vmem:[%s4775_s3 + $0x268] sm:$0xff] %v3390_v31  ;;  %v1193_v33 = vpop.f32.mrb[25].mxu1  ;;  %3243 = vmatmul.mubr.msk.f32.gmra.mrb[130].mxu1 %vm365_vm0, %v262_v25 }
 0x162   : > { %2295 = vst [vmem:[%s4775_s3 + $0x128] sm:$0xff] %v794_v32  ;;  %3510 = vmatprep.mubr.msk.f32.mxu0 %vm365_vm0, %v4865_v63  ;;  %2332 = vst [vmem:[%s4775_s3 + $0x250] sm:$0xff] %v1193_v33  ;;  %3244 = vmatprep.mubr.msk.f32.mxu1 %vm365_vm0, %v263_v30 }
 0x164   : > { %v798_v34 = vpop.f32.mrb[26].mxu0  ;;  %v3393_v36 = vpop.f32.mrb[26].mxu1 }
 0x165   : > { %2297 = vst [vmem:[%s4775_s3 + $0x138] sm:$0xff] %v798_v34  ;;  %v800_v37 = vpop.f32.mrb[27].mxu0  ;;  %3511 = vmatmul.mubr.msk.f32.gmra.mrb[132].mxu0 %vm365_vm0, %v4880_v5  ;;  %2341 = vst [vmem:[%s4775_s3 + $0x298] sm:$0xff] %v3393_v36  ;;  %v1203_v38 = vpop.f32.mrb[27].mxu1  ;;  %3245 = vmatmul.mubr.msk.f32.gmra.mrb[132].mxu1 %vm365_vm0, %v263_v30 }
 0x166   : > { %2298 = vst [vmem:[%s4775_s3 + $0x140] sm:$0xff] %v800_v37  ;;  %3513 = vmatprep.mubr.msk.f32.mxu0 %vm365_vm0, %v4895_v10  ;;  %2338 = vst [vmem:[%s4775_s3 + $0x280] sm:$0xff] %v1203_v38  ;;  %3246 = vmatprep.mubr.msk.f32.mxu1 %vm365_vm0, %v264_v35 }
 0x168   : > { %v804_v39 = vpop.f32.mrb[28].mxu0  ;;  %v3396_v41 = vpop.f32.mrb[28].mxu1 }
 0x169   : > { %2300 = vst [vmem:[%s4775_s3 + $0x150] sm:$0xff] %v804_v39  ;;  %v806_v42 = vpop.f32.mrb[29].mxu0  ;;  %3514 = vmatmul.mubr.msk.f32.gmra.mrb[134].mxu0 %vm365_vm0, %v4910_v15  ;;  %2347 = vst [vmem:[%s4775_s3 + $0x2c8] sm:$0xff] %v3396_v41  ;;  %v1213_v43 = vpop.f32.mrb[29].mxu1  ;;  %3247 = vmatmul.mubr.msk.f32.gmra.mrb[134].mxu1 %vm365_vm0, %v264_v35 }
 0x16a   : > { %2301 = vst [vmem:[%s4775_s3 + $0x158] sm:$0xff] %v806_v42  ;;  %3516 = vmatprep.mubr.msk.f32.mxu0 %vm365_vm0, %v261_v20  ;;  %2344 = vst [vmem:[%s4775_s3 + $0x2b0] sm:$0xff] %v1213_v43  ;;  %3248 = vmatprep.mubr.msk.f32.mxu1 %vm365_vm0, %v265_v40 }
 0x16c   : > { %v810_v44 = vpop.f32.mrb[30].mxu0  ;;  %v3399_v46 = vpop.f32.mrb[30].mxu1 }
 0x16d   : > { %2303 = vst [vmem:[%s4775_s3 + $0x168] sm:$0xff] %v810_v44  ;;  %v812_v47 = vpop.f32.mrb[31].mxu0  ;;  %3517 = vmatmul.mubr.msk.f32.gmra.mrb[136].mxu0 %vm365_vm0, %v262_v25  ;;  %2353 = vst [vmem:[%s4775_s3 + $0x2f8] sm:$0xff] %v3399_v46  ;;  %v1223_v48 = vpop.f32.mrb[31].mxu1  ;;  %3249 = vmatmul.mubr.msk.f32.gmra.mrb[136].mxu1 %vm365_vm0, %v265_v40 }
 0x16e   : > { %2304 = vst [vmem:[%s4775_s3 + $0x170] sm:$0xff] %v812_v47  ;;  %3519 = vmatprep.mubr.msk.f32.mxu0 %vm365_vm0, %v263_v30  ;;  %2350 = vst [vmem:[%s4775_s3 + $0x2e0] sm:$0xff] %v1223_v48  ;;  %3250 = vmatprep.mubr.msk.f32.mxu1 %vm365_vm0, %v266_v45 }
 0x170   : > { %v816_v49 = vpop.f32.mrb[32].mxu0  ;;  %v3402_v51 = vpop.f32.mrb[32].mxu1 }
 0x171   : > { %2306 = vst [vmem:[%s4775_s3 + $0x180] sm:$0xff] %v816_v49  ;;  %v818_v52 = vpop.f32.mrb[33].mxu0  ;;  %3520 = vmatmul.mubr.msk.f32.gmra.mrb[138].mxu0 %vm365_vm0, %v264_v35  ;;  %2359 = vst [vmem:[%s4775_s3 + $0x328] sm:$0xff] %v3402_v51  ;;  %v1233_v53 = vpop.f32.mrb[33].mxu1  ;;  %3251 = vmatmul.mubr.msk.f32.gmra.mrb[138].mxu1 %vm365_vm0, %v266_v45 }
 0x172   : > { %2307 = vst [vmem:[%s4775_s3 + $0x188] sm:$0xff] %v818_v52  ;;  %3522 = vmatprep.mubr.msk.f32.mxu0 %vm365_vm0, %v265_v40  ;;  %2356 = vst [vmem:[%s4775_s3 + $0x310] sm:$0xff] %v1233_v53  ;;  %3252 = vmatprep.mubr.msk.f32.mxu1 %vm365_vm0, %v267_v50 }
 0x174   : > { %v822_v0 = vpop.f32.mrb[34].mxu0  ;;  %v3405_v55 = vpop.f32.mrb[34].mxu1 }
 0x175   : > { %2309 = vst [vmem:[%s4775_s3 + $0x198] sm:$0xff] %v822_v0  ;;  %v824_v56 = vpop.f32.mrb[35].mxu0  ;;  %3523 = vmatmul.mubr.msk.f32.gmra.mrb[140].mxu0 %vm365_vm0, %v266_v45  ;;  %2365 = vst [vmem:[%s4775_s3 + $0x358] sm:$0xff] %v3405_v55  ;;  %v1243_v57 = vpop.f32.mrb[35].mxu1  ;;  %3253 = vmatmul.mubr.msk.f32.gmra.mrb[140].mxu1 %vm365_vm0, %v267_v50 }
 0x176   : > { %2310 = vst [vmem:[%s4775_s3 + $0x1a0] sm:$0xff] %v824_v56  ;;  %3525 = vmatprep.mubr.msk.f32.mxu0 %vm365_vm0, %v267_v50  ;;  %2362 = vst [vmem:[%s4775_s3 + $0x340] sm:$0xff] %v1243_v57  ;;  %3254 = vmatprep.mubr.msk.f32.mxu1 %vm365_vm0, %v268_v54 }
 0x178   : > { %v828_v58 = vpop.f32.mrb[36].mxu0  ;;  %v3408_v59 = vpop.f32.mrb[36].mxu1 }
 0x179   : > { %2312 = vst [vmem:[%s4775_s3 + $0x1b0] sm:$0xff] %v828_v58  ;;  %v830_v60 = vpop.f32.mrb[37].mxu0  ;;  %3526 = vmatmul.mubr.msk.f32.gmra.mrb[142].mxu0 %vm365_vm0, %v268_v54  ;;  %2371 = vst [vmem:[%s4775_s3 + $0x388] sm:$0xff] %v3408_v59  ;;  %v1253_v61 = vpop.f32.mrb[37].mxu1  ;;  %3255 = vmatmul.mubr.msk.f32.gmra.mrb[142].mxu1 %vm365_vm0, %v268_v54 }
 0x17a   : > { %2313 = vst [vmem:[%s4775_s3 + $0x1b8] sm:$0xff] %v830_v60  ;;  %2368 = vst [vmem:[%s4775_s3 + $0x370] sm:$0xff] %v1253_v61 }
 0x17c   : > { %v834_v62 = vpop.f32.mrb[38].mxu0  ;;  %v3411_v63 = vpop.f32.mrb[38].mxu1 }
 0x17d   : > { %2315 = vst [vmem:[%s4775_s3 + $0x1c8] sm:$0xff] %v834_v62  ;;  %v836_v1 = vpop.f32.mrb[39].mxu0  ;;  %2377 = vst [vmem:[%s4775_s3 + $0x3b8] sm:$0xff] %v3411_v63  ;;  %v1263_v2 = vpop.f32.mrb[39].mxu1 }
 0x17e   : > { %2316 = vst [vmem:[%s4775_s3 + $0x1d0] sm:$0xff] %v836_v1  ;;  %2374 = vst [vmem:[%s4775_s3 + $0x3a0] sm:$0xff] %v1263_v2 }
 0x180   : > { %v840_v3 = vpop.f32.mrb[40].mxu0  ;;  %v3414_v4 = vpop.f32.mrb[40].mxu1 }
 0x181   : > { %2318 = vst [vmem:[%s4775_s3 + $0x1e0] sm:$0xff] %v840_v3  ;;  %v842_v5 = vpop.f32.mrb[41].mxu0  ;;  %2383 = vst [vmem:[%s4775_s3 + $0x3e8] sm:$0xff] %v3414_v4  ;;  %v1273_v6 = vpop.f32.mrb[41].mxu1 }
 0x182   : > { %2319 = vst [vmem:[%s4775_s3 + $0x1e8] sm:$0xff] %v842_v5  ;;  %2380 = vst [vmem:[%s4775_s3 + $0x3d0] sm:$0xff] %v1273_v6 }
 0x184   : > { %v846_v7 = vpop.f32.mrb[42].mxu0  ;;  %v3417_v8 = vpop.f32.mrb[42].mxu1 }
 0x185   : > { %2321 = vst [vmem:[%s4775_s3 + $0x1f8] sm:$0xff] %v846_v7  ;;  %v848_v9 = vpop.f32.mrb[43].mxu0  ;;  %2389 = vst [vmem:[%s4775_s3 + $0x418] sm:$0xff] %v3417_v8  ;;  %v1283_v10 = vpop.f32.mrb[43].mxu1 }
 0x186   : > { %2322 = vst [vmem:[%s4775_s3 + $0x200] sm:$0xff] %v848_v9  ;;  %2386 = vst [vmem:[%s4775_s3 + $0x400] sm:$0xff] %v1283_v10 }
 0x188   : > { %v852_v11 = vpop.f32.mrb[44].mxu0  ;;  %v3420_v12 = vpop.f32.mrb[44].mxu1 }
 0x189   : > { %2324 = vst [vmem:[%s4775_s3 + $0x210] sm:$0xff] %v852_v11  ;;  %v854_v13 = vpop.f32.mrb[45].mxu0  ;;  %2395 = vst [vmem:[%s4775_s3 + $0x448] sm:$0xff] %v3420_v12  ;;  %v1293_v14 = vpop.f32.mrb[45].mxu1 }
 0x18a   : > { %2325 = vst [vmem:[%s4775_s3 + $0x218] sm:$0xff] %v854_v13  ;;  %2392 = vst [vmem:[%s4775_s3 + $0x430] sm:$0xff] %v1293_v14 }
 0x18c   : > { %v858_v15 = vpop.f32.mrb[46].mxu0  ;;  %v3423_v16 = vpop.f32.mrb[46].mxu1 }
 0x18d   : > { %2327 = vst [vmem:[%s4775_s3 + $0x228] sm:$0xff] %v858_v15  ;;  %v860_v17 = vpop.f32.mrb[47].mxu0  ;;  %2401 = vst [vmem:[%s4775_s3 + $0x478] sm:$0xff] %v3423_v16  ;;  %v1303_v18 = vpop.f32.mrb[47].mxu1 }
 0x18e   : > { %2328 = vst [vmem:[%s4775_s3 + $0x230] sm:$0xff] %v860_v17  ;;  %2398 = vst [vmem:[%s4775_s3 + $0x460] sm:$0xff] %v1303_v18 }
 0x190   : > { %v864_v19 = vpop.f32.mrb[48].mxu0  ;;  %v1666_v20 = vpop.f32.mrb[48].mxu1 }
 0x191   : > { %2330 = vst [vmem:[%s4775_s3 + $0x240] sm:$0xff] %v864_v19  ;;  %v866_v21 = vpop.f32.mrb[49].mxu0  ;;  %2402 = vst [vmem:[%s4775_s3 + $0x480] sm:$0xff] %v1666_v20  ;;  %v1668_v22 = vpop.f32.mrb[49].mxu1 }
 0x192   : > { %2331 = vst [vmem:[%s4775_s3 + $0x248] sm:$0xff] %v866_v21  ;;  %2403 = vst [vmem:[%s4775_s3 + $0x488] sm:$0xff] %v1668_v22 }
 0x194   : > { %v870_v23 = vpop.f32.mrb[50].mxu0  ;;  %v1672_v24 = vpop.f32.mrb[50].mxu1 }
 0x195   : > { %2333 = vst [vmem:[%s4775_s3 + $0x258] sm:$0xff] %v870_v23  ;;  %v872_v25 = vpop.f32.mrb[51].mxu0  ;;  %2405 = vst [vmem:[%s4775_s3 + $0x498] sm:$0xff] %v1672_v24  ;;  %v1674_v26 = vpop.f32.mrb[51].mxu1 }
 0x196   : > { %2334 = vst [vmem:[%s4775_s3 + $0x260] sm:$0xff] %v872_v25  ;;  %2406 = vst [vmem:[%s4775_s3 + $0x4a0] sm:$0xff] %v1674_v26 }
 0x198   : > { %v876_v27 = vpop.f32.mrb[52].mxu0  ;;  %v1678_v28 = vpop.f32.mrb[52].mxu1 }
 0x199   : > { %2336 = vst [vmem:[%s4775_s3 + $0x270] sm:$0xff] %v876_v27  ;;  %v878_v29 = vpop.f32.mrb[53].mxu0  ;;  %2408 = vst [vmem:[%s4775_s3 + $0x4b0] sm:$0xff] %v1678_v28  ;;  %v1680_v30 = vpop.f32.mrb[53].mxu1 }
 0x19a   : > { %2337 = vst [vmem:[%s4775_s3 + $0x278] sm:$0xff] %v878_v29  ;;  %2409 = vst [vmem:[%s4775_s3 + $0x4b8] sm:$0xff] %v1680_v30 }
 0x19c   : > { %v882_v31 = vpop.f32.mrb[54].mxu0  ;;  %v1684_v32 = vpop.f32.mrb[54].mxu1 }
 0x19d   : > { %2339 = vst [vmem:[%s4775_s3 + $0x288] sm:$0xff] %v882_v31  ;;  %v884_v33 = vpop.f32.mrb[55].mxu0  ;;  %2411 = vst [vmem:[%s4775_s3 + $0x4c8] sm:$0xff] %v1684_v32  ;;  %v1686_v34 = vpop.f32.mrb[55].mxu1 }
 0x19e   : > { %2340 = vst [vmem:[%s4775_s3 + $0x290] sm:$0xff] %v884_v33  ;;  %2412 = vst [vmem:[%s4775_s3 + $0x4d0] sm:$0xff] %v1686_v34 }
 0x1a0   : > { %v888_v35 = vpop.f32.mrb[56].mxu0  ;;  %v1690_v36 = vpop.f32.mrb[56].mxu1 }
 0x1a1   : > { %2342 = vst [vmem:[%s4775_s3 + $0x2a0] sm:$0xff] %v888_v35  ;;  %v890_v37 = vpop.f32.mrb[57].mxu0  ;;  %2414 = vst [vmem:[%s4775_s3 + $0x4e0] sm:$0xff] %v1690_v36  ;;  %v1692_v38 = vpop.f32.mrb[57].mxu1 }
 0x1a2   : > { %2343 = vst [vmem:[%s4775_s3 + $0x2a8] sm:$0xff] %v890_v37  ;;  %2415 = vst [vmem:[%s4775_s3 + $0x4e8] sm:$0xff] %v1692_v38 }
 0x1a4   : > { %v894_v39 = vpop.f32.mrb[58].mxu0  ;;  %v1696_v40 = vpop.f32.mrb[58].mxu1 }
 0x1a5   : > { %2345 = vst [vmem:[%s4775_s3 + $0x2b8] sm:$0xff] %v894_v39  ;;  %v896_v41 = vpop.f32.mrb[59].mxu0  ;;  %2417 = vst [vmem:[%s4775_s3 + $0x4f8] sm:$0xff] %v1696_v40  ;;  %v1698_v42 = vpop.f32.mrb[59].mxu1 }
 0x1a6   : > { %2346 = vst [vmem:[%s4775_s3 + $0x2c0] sm:$0xff] %v896_v41  ;;  %2418 = vst [vmem:[%s4775_s3 + $0x500] sm:$0xff] %v1698_v42 }
 0x1a8   : > { %v900_v43 = vpop.f32.mrb[60].mxu0  ;;  %v1702_v44 = vpop.f32.mrb[60].mxu1 }
 0x1a9   : > { %2348 = vst [vmem:[%s4775_s3 + $0x2d0] sm:$0xff] %v900_v43  ;;  %v902_v45 = vpop.f32.mrb[61].mxu0  ;;  %2420 = vst [vmem:[%s4775_s3 + $0x510] sm:$0xff] %v1702_v44  ;;  %v1704_v46 = vpop.f32.mrb[61].mxu1 }
 0x1aa   : > { %2349 = vst [vmem:[%s4775_s3 + $0x2d8] sm:$0xff] %v902_v45  ;;  %2421 = vst [vmem:[%s4775_s3 + $0x518] sm:$0xff] %v1704_v46 }
 0x1ac   : > { %v906_v47 = vpop.f32.mrb[62].mxu0  ;;  %v1708_v48 = vpop.f32.mrb[62].mxu1 }
 0x1ad   : > { %2351 = vst [vmem:[%s4775_s3 + $0x2e8] sm:$0xff] %v906_v47  ;;  %v908_v49 = vpop.f32.mrb[63].mxu0  ;;  %2423 = vst [vmem:[%s4775_s3 + $0x528] sm:$0xff] %v1708_v48  ;;  %v1710_v50 = vpop.f32.mrb[63].mxu1 }
 0x1ae   : > { %2352 = vst [vmem:[%s4775_s3 + $0x2f0] sm:$0xff] %v908_v49  ;;  %2424 = vst [vmem:[%s4775_s3 + $0x530] sm:$0xff] %v1710_v50 }
 0x1b0   : > { %v912_v51 = vpop.f32.mrb[64].mxu0  ;;  %v1714_v52 = vpop.f32.mrb[64].mxu1 }
 0x1b1   : > { %2354 = vst [vmem:[%s4775_s3 + $0x300] sm:$0xff] %v912_v51  ;;  %v914_v53 = vpop.f32.mrb[65].mxu0  ;;  %2426 = vst [vmem:[%s4775_s3 + $0x540] sm:$0xff] %v1714_v52  ;;  %v1716_v0 = vpop.f32.mrb[65].mxu1 }
 0x1b2   : > { %2355 = vst [vmem:[%s4775_s3 + $0x308] sm:$0xff] %v914_v53  ;;  %2427 = vst [vmem:[%s4775_s3 + $0x548] sm:$0xff] %v1716_v0 }
 0x1b4   : > { %v918_v54 = vpop.f32.mrb[66].mxu0  ;;  %v1720_v55 = vpop.f32.mrb[66].mxu1 }
 0x1b5   : > { %2357 = vst [vmem:[%s4775_s3 + $0x318] sm:$0xff] %v918_v54  ;;  %v920_v56 = vpop.f32.mrb[67].mxu0  ;;  %2429 = vst [vmem:[%s4775_s3 + $0x558] sm:$0xff] %v1720_v55  ;;  %v1722_v57 = vpop.f32.mrb[67].mxu1 }
 0x1b6   : > { %2358 = vst [vmem:[%s4775_s3 + $0x320] sm:$0xff] %v920_v56  ;;  %2430 = vst [vmem:[%s4775_s3 + $0x560] sm:$0xff] %v1722_v57 }
 0x1b8   : > { %v924_v58 = vpop.f32.mrb[68].mxu0  ;;  %v1726_v59 = vpop.f32.mrb[68].mxu1 }
 0x1b9   : > { %2360 = vst [vmem:[%s4775_s3 + $0x330] sm:$0xff] %v924_v58  ;;  %v926_v60 = vpop.f32.mrb[69].mxu0  ;;  %2432 = vst [vmem:[%s4775_s3 + $0x570] sm:$0xff] %v1726_v59  ;;  %v1728_v61 = vpop.f32.mrb[69].mxu1 }
 0x1ba   : > { %2361 = vst [vmem:[%s4775_s3 + $0x338] sm:$0xff] %v926_v60  ;;  %2433 = vst [vmem:[%s4775_s3 + $0x578] sm:$0xff] %v1728_v61 }
 0x1bc   : > { %v930_v62 = vpop.f32.mrb[70].mxu0  ;;  %v1732_v63 = vpop.f32.mrb[70].mxu1 }
 0x1bd   : > { %2363 = vst [vmem:[%s4775_s3 + $0x348] sm:$0xff] %v930_v62  ;;  %v932_v1 = vpop.f32.mrb[71].mxu0  ;;  %2435 = vst [vmem:[%s4775_s3 + $0x588] sm:$0xff] %v1732_v63  ;;  %v1734_v2 = vpop.f32.mrb[71].mxu1 }
 0x1be   : > { %2364 = vst [vmem:[%s4775_s3 + $0x350] sm:$0xff] %v932_v1  ;;  %2436 = vst [vmem:[%s4775_s3 + $0x590] sm:$0xff] %v1734_v2 }
 0x1c0   : > { %v936_v3 = vpop.f32.mrb[72].mxu0  ;;  %v1738_v4 = vpop.f32.mrb[72].mxu1 }
 0x1c1   : > { %2366 = vst [vmem:[%s4775_s3 + $0x360] sm:$0xff] %v936_v3  ;;  %v938_v5 = vpop.f32.mrb[73].mxu0  ;;  %2438 = vst [vmem:[%s4775_s3 + $0x5a0] sm:$0xff] %v1738_v4  ;;  %v1740_v6 = vpop.f32.mrb[73].mxu1 }
 0x1c2   : > { %2367 = vst [vmem:[%s4775_s3 + $0x368] sm:$0xff] %v938_v5  ;;  %2439 = vst [vmem:[%s4775_s3 + $0x5a8] sm:$0xff] %v1740_v6 }
 0x1c4   : > { %v942_v7 = vpop.f32.mrb[74].mxu0  ;;  %v1744_v8 = vpop.f32.mrb[74].mxu1 }
 0x1c5   : > { %2369 = vst [vmem:[%s4775_s3 + $0x378] sm:$0xff] %v942_v7  ;;  %v944_v9 = vpop.f32.mrb[75].mxu0  ;;  %2441 = vst [vmem:[%s4775_s3 + $0x5b8] sm:$0xff] %v1744_v8  ;;  %v1746_v10 = vpop.f32.mrb[75].mxu1 }
 0x1c6   : > { %2370 = vst [vmem:[%s4775_s3 + $0x380] sm:$0xff] %v944_v9  ;;  %2442 = vst [vmem:[%s4775_s3 + $0x5c0] sm:$0xff] %v1746_v10 }
 0x1c8   : > { %v948_v11 = vpop.f32.mrb[76].mxu0  ;;  %v1750_v12 = vpop.f32.mrb[76].mxu1 }
 0x1c9   : > { %2372 = vst [vmem:[%s4775_s3 + $0x390] sm:$0xff] %v948_v11  ;;  %v950_v13 = vpop.f32.mrb[77].mxu0  ;;  %2444 = vst [vmem:[%s4775_s3 + $0x5d0] sm:$0xff] %v1750_v12  ;;  %v1752_v14 = vpop.f32.mrb[77].mxu1 }
 0x1ca   : > { %2373 = vst [vmem:[%s4775_s3 + $0x398] sm:$0xff] %v950_v13  ;;  %2445 = vst [vmem:[%s4775_s3 + $0x5d8] sm:$0xff] %v1752_v14 }
 0x1cc   : > { %v954_v15 = vpop.f32.mrb[78].mxu0  ;;  %v1756_v16 = vpop.f32.mrb[78].mxu1 }
 0x1cd   : > { %2375 = vst [vmem:[%s4775_s3 + $0x3a8] sm:$0xff] %v954_v15  ;;  %v956_v17 = vpop.f32.mrb[79].mxu0  ;;  %2447 = vst [vmem:[%s4775_s3 + $0x5e8] sm:$0xff] %v1756_v16  ;;  %v1758_v18 = vpop.f32.mrb[79].mxu1 }
 0x1ce   : > { %2376 = vst [vmem:[%s4775_s3 + $0x3b0] sm:$0xff] %v956_v17  ;;  %2448 = vst [vmem:[%s4775_s3 + $0x5f0] sm:$0xff] %v1758_v18 }
 0x1d0   : > { %v960_v19 = vpop.f32.mrb[80].mxu0  ;;  %v1762_v20 = vpop.f32.mrb[80].mxu1 }
 0x1d1   : > { %2378 = vst [vmem:[%s4775_s3 + $0x3c0] sm:$0xff] %v960_v19  ;;  %v962_v21 = vpop.f32.mrb[81].mxu0  ;;  %2450 = vst [vmem:[%s4775_s3 + $0x600] sm:$0xff] %v1762_v20  ;;  %v1764_v22 = vpop.f32.mrb[81].mxu1 }
 0x1d2   : > { %2379 = vst [vmem:[%s4775_s3 + $0x3c8] sm:$0xff] %v962_v21  ;;  %2451 = vst [vmem:[%s4775_s3 + $0x608] sm:$0xff] %v1764_v22 }
 0x1d4   : > { %v966_v23 = vpop.f32.mrb[82].mxu0  ;;  %v1768_v24 = vpop.f32.mrb[82].mxu1 }
 0x1d5   : > { %2381 = vst [vmem:[%s4775_s3 + $0x3d8] sm:$0xff] %v966_v23  ;;  %v968_v25 = vpop.f32.mrb[83].mxu0  ;;  %2453 = vst [vmem:[%s4775_s3 + $0x618] sm:$0xff] %v1768_v24  ;;  %v1770_v26 = vpop.f32.mrb[83].mxu1 }
 0x1d6   : > { %2382 = vst [vmem:[%s4775_s3 + $0x3e0] sm:$0xff] %v968_v25  ;;  %2454 = vst [vmem:[%s4775_s3 + $0x620] sm:$0xff] %v1770_v26 }
 0x1d8   : > { %v972_v27 = vpop.f32.mrb[84].mxu0  ;;  %v1774_v28 = vpop.f32.mrb[84].mxu1 }
 0x1d9   : > { %2384 = vst [vmem:[%s4775_s3 + $0x3f0] sm:$0xff] %v972_v27  ;;  %v974_v29 = vpop.f32.mrb[85].mxu0  ;;  %2456 = vst [vmem:[%s4775_s3 + $0x630] sm:$0xff] %v1774_v28  ;;  %v1776_v30 = vpop.f32.mrb[85].mxu1 }
 0x1da   : > { %2385 = vst [vmem:[%s4775_s3 + $0x3f8] sm:$0xff] %v974_v29  ;;  %2457 = vst [vmem:[%s4775_s3 + $0x638] sm:$0xff] %v1776_v30 }
 0x1dc   : > { %v978_v31 = vpop.f32.mrb[86].mxu0  ;;  %v1780_v32 = vpop.f32.mrb[86].mxu1 }
 0x1dd   : > { %2387 = vst [vmem:[%s4775_s3 + $0x408] sm:$0xff] %v978_v31  ;;  %v980_v33 = vpop.f32.mrb[87].mxu0  ;;  %2459 = vst [vmem:[%s4775_s3 + $0x648] sm:$0xff] %v1780_v32  ;;  %v1782_v34 = vpop.f32.mrb[87].mxu1 }
 0x1de   : > { %2388 = vst [vmem:[%s4775_s3 + $0x410] sm:$0xff] %v980_v33  ;;  %2460 = vst [vmem:[%s4775_s3 + $0x650] sm:$0xff] %v1782_v34 }
 0x1e0   : > { %v984_v35 = vpop.f32.mrb[88].mxu0  ;;  %v1786_v36 = vpop.f32.mrb[88].mxu1 }
 0x1e1   : > { %2390 = vst [vmem:[%s4775_s3 + $0x420] sm:$0xff] %v984_v35  ;;  %v986_v37 = vpop.f32.mrb[89].mxu0  ;;  %2462 = vst [vmem:[%s4775_s3 + $0x660] sm:$0xff] %v1786_v36  ;;  %v1788_v38 = vpop.f32.mrb[89].mxu1 }
 0x1e2   : > { %2391 = vst [vmem:[%s4775_s3 + $0x428] sm:$0xff] %v986_v37  ;;  %2463 = vst [vmem:[%s4775_s3 + $0x668] sm:$0xff] %v1788_v38 }
 0x1e4   : > { %v990_v39 = vpop.f32.mrb[90].mxu0  ;;  %v1792_v40 = vpop.f32.mrb[90].mxu1 }
 0x1e5   : > { %2393 = vst [vmem:[%s4775_s3 + $0x438] sm:$0xff] %v990_v39  ;;  %v992_v41 = vpop.f32.mrb[91].mxu0  ;;  %2465 = vst [vmem:[%s4775_s3 + $0x678] sm:$0xff] %v1792_v40  ;;  %v1794_v42 = vpop.f32.mrb[91].mxu1 }
 0x1e6   : > { %2394 = vst [vmem:[%s4775_s3 + $0x440] sm:$0xff] %v992_v41  ;;  %2466 = vst [vmem:[%s4775_s3 + $0x680] sm:$0xff] %v1794_v42 }
 0x1e8   : > { %v996_v43 = vpop.f32.mrb[92].mxu0  ;;  %v1798_v44 = vpop.f32.mrb[92].mxu1 }
 0x1e9   : > { %2396 = vst [vmem:[%s4775_s3 + $0x450] sm:$0xff] %v996_v43  ;;  %v998_v45 = vpop.f32.mrb[93].mxu0  ;;  %2468 = vst [vmem:[%s4775_s3 + $0x690] sm:$0xff] %v1798_v44  ;;  %v1800_v46 = vpop.f32.mrb[93].mxu1 }
 0x1ea   : > { %2397 = vst [vmem:[%s4775_s3 + $0x458] sm:$0xff] %v998_v45  ;;  %2469 = vst [vmem:[%s4775_s3 + $0x698] sm:$0xff] %v1800_v46 }
 0x1ec   : > { %v1002_v47 = vpop.f32.mrb[94].mxu0  ;;  %v1804_v48 = vpop.f32.mrb[94].mxu1 }
 0x1ed   : > { %2399 = vst [vmem:[%s4775_s3 + $0x468] sm:$0xff] %v1002_v47  ;;  %v1004_v49 = vpop.f32.mrb[95].mxu0  ;;  %2471 = vst [vmem:[%s4775_s3 + $0x6a8] sm:$0xff] %v1804_v48  ;;  %v1806_v50 = vpop.f32.mrb[95].mxu1 }
 0x1ee   : > { %2400 = vst [vmem:[%s4775_s3 + $0x470] sm:$0xff] %v1004_v49  ;;  %2472 = vst [vmem:[%s4775_s3 + $0x6b0] sm:$0xff] %v1806_v50 }
 0x1f0   : > { %v3458_v51 = vpop.f32.mrb[96].mxu0  ;;  %v1810_v52 = vpop.f32.mrb[96].mxu1 }
 0x1f1   : > { %2407 = vst [vmem:[%s4775_s3 + $0x4a8] sm:$0xff] %v3458_v51  ;;  %v2019_v53 = vpop.f32.mrb[97].mxu0  ;;  %2474 = vst [vmem:[%s4775_s3 + $0x6c0] sm:$0xff] %v1810_v52  ;;  %v1812_v0 = vpop.f32.mrb[97].mxu1 }
 0x1f2   : > { %2404 = vst [vmem:[%s4775_s3 + $0x490] sm:$0xff] %v2019_v53  ;;  %2475 = vst [vmem:[%s4775_s3 + $0x6c8] sm:$0xff] %v1812_v0 }
 0x1f4   : > { %v3461_v54 = vpop.f32.mrb[98].mxu0  ;;  %v1816_v55 = vpop.f32.mrb[98].mxu1 }
 0x1f5   : > { %2413 = vst [vmem:[%s4775_s3 + $0x4d8] sm:$0xff] %v3461_v54  ;;  %v2029_v56 = vpop.f32.mrb[99].mxu0  ;;  %2477 = vst [vmem:[%s4775_s3 + $0x6d8] sm:$0xff] %v1816_v55  ;;  %v1818_v57 = vpop.f32.mrb[99].mxu1 }
 0x1f6   : > { %2410 = vst [vmem:[%s4775_s3 + $0x4c0] sm:$0xff] %v2029_v56  ;;  %2478 = vst [vmem:[%s4775_s3 + $0x6e0] sm:$0xff] %v1818_v57 }
 0x1f8   : > { %v3464_v58 = vpop.f32.mrb[100].mxu0  ;;  %v1822_v59 = vpop.f32.mrb[100].mxu1 }
 0x1f9   : > { %2419 = vst [vmem:[%s4775_s3 + $0x508] sm:$0xff] %v3464_v58  ;;  %v2039_v60 = vpop.f32.mrb[101].mxu0  ;;  %2480 = vst [vmem:[%s4775_s3 + $0x6f0] sm:$0xff] %v1822_v59  ;;  %v1824_v61 = vpop.f32.mrb[101].mxu1 }
 0x1fa   : > { %2416 = vst [vmem:[%s4775_s3 + $0x4f0] sm:$0xff] %v2039_v60  ;;  %2481 = vst [vmem:[%s4775_s3 + $0x6f8] sm:$0xff] %v1824_v61 }
 0x1fc   : > { %v3467_v62 = vpop.f32.mrb[102].mxu0  ;;  %v1828_v63 = vpop.f32.mrb[102].mxu1 }
 0x1fd   : > { %2425 = vst [vmem:[%s4775_s3 + $0x538] sm:$0xff] %v3467_v62  ;;  %v2049_v1 = vpop.f32.mrb[103].mxu0  ;;  %2483 = vst [vmem:[%s4775_s3 + $0x708] sm:$0xff] %v1828_v63  ;;  %v1830_v2 = vpop.f32.mrb[103].mxu1 }
 0x1fe   : > { %2422 = vst [vmem:[%s4775_s3 + $0x520] sm:$0xff] %v2049_v1  ;;  %2484 = vst [vmem:[%s4775_s3 + $0x710] sm:$0xff] %v1830_v2 }
 0x200   : > { %v3470_v3 = vpop.f32.mrb[104].mxu0  ;;  %v1834_v4 = vpop.f32.mrb[104].mxu1 }
 0x201   : > { %2431 = vst [vmem:[%s4775_s3 + $0x568] sm:$0xff] %v3470_v3  ;;  %v2059_v5 = vpop.f32.mrb[105].mxu0  ;;  %2486 = vst [vmem:[%s4775_s3 + $0x720] sm:$0xff] %v1834_v4  ;;  %v1836_v6 = vpop.f32.mrb[105].mxu1 }
 0x202   : > { %2428 = vst [vmem:[%s4775_s3 + $0x550] sm:$0xff] %v2059_v5  ;;  %2487 = vst [vmem:[%s4775_s3 + $0x728] sm:$0xff] %v1836_v6 }
 0x204   : > { %v3473_v7 = vpop.f32.mrb[106].mxu0  ;;  %v1840_v8 = vpop.f32.mrb[106].mxu1 }
 0x205   : > { %2437 = vst [vmem:[%s4775_s3 + $0x598] sm:$0xff] %v3473_v7  ;;  %v2069_v9 = vpop.f32.mrb[107].mxu0  ;;  %2489 = vst [vmem:[%s4775_s3 + $0x738] sm:$0xff] %v1840_v8  ;;  %v1842_v10 = vpop.f32.mrb[107].mxu1 }
 0x206   : > { %2434 = vst [vmem:[%s4775_s3 + $0x580] sm:$0xff] %v2069_v9  ;;  %2490 = vst [vmem:[%s4775_s3 + $0x740] sm:$0xff] %v1842_v10 }
 0x208   : > { %v3476_v11 = vpop.f32.mrb[108].mxu0  ;;  %v1846_v12 = vpop.f32.mrb[108].mxu1 }
 0x209   : > { %2443 = vst [vmem:[%s4775_s3 + $0x5c8] sm:$0xff] %v3476_v11  ;;  %v2079_v13 = vpop.f32.mrb[109].mxu0  ;;  %2492 = vst [vmem:[%s4775_s3 + $0x750] sm:$0xff] %v1846_v12  ;;  %v1848_v14 = vpop.f32.mrb[109].mxu1 }
 0x20a   : > { %2440 = vst [vmem:[%s4775_s3 + $0x5b0] sm:$0xff] %v2079_v13  ;;  %2493 = vst [vmem:[%s4775_s3 + $0x758] sm:$0xff] %v1848_v14 }
 0x20c   : > { %v3479_v15 = vpop.f32.mrb[110].mxu0  ;;  %v1852_v16 = vpop.f32.mrb[110].mxu1 }
 0x20d   : > { %2449 = vst [vmem:[%s4775_s3 + $0x5f8] sm:$0xff] %v3479_v15  ;;  %v2089_v17 = vpop.f32.mrb[111].mxu0  ;;  %2495 = vst [vmem:[%s4775_s3 + $0x768] sm:$0xff] %v1852_v16  ;;  %v1854_v18 = vpop.f32.mrb[111].mxu1 }
 0x20e   : > { %2446 = vst [vmem:[%s4775_s3 + $0x5e0] sm:$0xff] %v2089_v17  ;;  %2496 = vst [vmem:[%s4775_s3 + $0x770] sm:$0xff] %v1854_v18 }
 0x210   : > { %v3482_v19 = vpop.f32.mrb[112].mxu0  ;;  %v1858_v20 = vpop.f32.mrb[112].mxu1 }
 0x211   : > { %2455 = vst [vmem:[%s4775_s3 + $0x628] sm:$0xff] %v3482_v19  ;;  %v2099_v21 = vpop.f32.mrb[113].mxu0  ;;  %2498 = vst [vmem:[%s4775_s3 + $0x780] sm:$0xff] %v1858_v20  ;;  %v1860_v22 = vpop.f32.mrb[113].mxu1 }
 0x212   : > { %2452 = vst [vmem:[%s4775_s3 + $0x610] sm:$0xff] %v2099_v21  ;;  %2499 = vst [vmem:[%s4775_s3 + $0x788] sm:$0xff] %v1860_v22 }
 0x214   : > { %v3485_v23 = vpop.f32.mrb[114].mxu0  ;;  %v1864_v24 = vpop.f32.mrb[114].mxu1 }
 0x215   : > { %2461 = vst [vmem:[%s4775_s3 + $0x658] sm:$0xff] %v3485_v23  ;;  %v2109_v25 = vpop.f32.mrb[115].mxu0  ;;  %2501 = vst [vmem:[%s4775_s3 + $0x798] sm:$0xff] %v1864_v24  ;;  %v1866_v26 = vpop.f32.mrb[115].mxu1 }
 0x216   : > { %2458 = vst [vmem:[%s4775_s3 + $0x640] sm:$0xff] %v2109_v25  ;;  %2502 = vst [vmem:[%s4775_s3 + $0x7a0] sm:$0xff] %v1866_v26 }
 0x218   : > { %v3488_v27 = vpop.f32.mrb[116].mxu0  ;;  %v1870_v28 = vpop.f32.mrb[116].mxu1 }
 0x219   : > { %2467 = vst [vmem:[%s4775_s3 + $0x688] sm:$0xff] %v3488_v27  ;;  %v2119_v29 = vpop.f32.mrb[117].mxu0  ;;  %2504 = vst [vmem:[%s4775_s3 + $0x7b0] sm:$0xff] %v1870_v28  ;;  %v1872_v30 = vpop.f32.mrb[117].mxu1 }
 0x21a   : > { %2464 = vst [vmem:[%s4775_s3 + $0x670] sm:$0xff] %v2119_v29  ;;  %2505 = vst [vmem:[%s4775_s3 + $0x7b8] sm:$0xff] %v1872_v30 }
 0x21c   : > { %v3491_v31 = vpop.f32.mrb[118].mxu0  ;;  %v1876_v32 = vpop.f32.mrb[118].mxu1 }
 0x21d   : > { %2473 = vst [vmem:[%s4775_s3 + $0x6b8] sm:$0xff] %v3491_v31  ;;  %v2129_v33 = vpop.f32.mrb[119].mxu0  ;;  %2507 = vst [vmem:[%s4775_s3 + $0x7c8] sm:$0xff] %v1876_v32  ;;  %v1878_v34 = vpop.f32.mrb[119].mxu1 }
 0x21e   : > { %2470 = vst [vmem:[%s4775_s3 + $0x6a0] sm:$0xff] %v2129_v33  ;;  %2508 = vst [vmem:[%s4775_s3 + $0x7d0] sm:$0xff] %v1878_v34 }
 0x220   : > { %v3494_v35 = vpop.f32.mrb[120].mxu0  ;;  %v1882_v36 = vpop.f32.mrb[120].mxu1 }
 0x221   : > { %2479 = vst [vmem:[%s4775_s3 + $0x6e8] sm:$0xff] %v3494_v35  ;;  %v2139_v37 = vpop.f32.mrb[121].mxu0  ;;  %2510 = vst [vmem:[%s4775_s3 + $0x7e0] sm:$0xff] %v1882_v36  ;;  %v1884_v38 = vpop.f32.mrb[121].mxu1 }
 0x222   : > { %2476 = vst [vmem:[%s4775_s3 + $0x6d0] sm:$0xff] %v2139_v37  ;;  %2511 = vst [vmem:[%s4775_s3 + $0x7e8] sm:$0xff] %v1884_v38 }
 0x224   : > { %v3497_v39 = vpop.f32.mrb[122].mxu0  ;;  %v1888_v40 = vpop.f32.mrb[122].mxu1 }
 0x225   : > { %2485 = vst [vmem:[%s4775_s3 + $0x718] sm:$0xff] %v3497_v39  ;;  %v2149_v41 = vpop.f32.mrb[123].mxu0  ;;  %2513 = vst [vmem:[%s4775_s3 + $0x7f8] sm:$0xff] %v1888_v40  ;;  %v1890_v42 = vpop.f32.mrb[123].mxu1 }
 0x226   : > { %2482 = vst [vmem:[%s4775_s3 + $0x700] sm:$0xff] %v2149_v41  ;;  %2514 = vst [vmem:[%s4775_s3 + $0x800] sm:$0xff] %v1890_v42 }
 0x228   : > { %v3500_v43 = vpop.f32.mrb[124].mxu0  ;;  %v1894_v44 = vpop.f32.mrb[124].mxu1 }
 0x229   : > { %2491 = vst [vmem:[%s4775_s3 + $0x748] sm:$0xff] %v3500_v43  ;;  %v2159_v45 = vpop.f32.mrb[125].mxu0  ;;  %2516 = vst [vmem:[%s4775_s3 + $0x810] sm:$0xff] %v1894_v44  ;;  %v1896_v46 = vpop.f32.mrb[125].mxu1 }
 0x22a   : > { %2488 = vst [vmem:[%s4775_s3 + $0x730] sm:$0xff] %v2159_v45  ;;  %2517 = vst [vmem:[%s4775_s3 + $0x818] sm:$0xff] %v1896_v46 }
 0x22c   : > { %v3503_v47 = vpop.f32.mrb[126].mxu0  ;;  %v1900_v48 = vpop.f32.mrb[126].mxu1 }
 0x22d   : > { %2497 = vst [vmem:[%s4775_s3 + $0x778] sm:$0xff] %v3503_v47  ;;  %v2169_v49 = vpop.f32.mrb[127].mxu0  ;;  %2519 = vst [vmem:[%s4775_s3 + $0x828] sm:$0xff] %v1900_v48  ;;  %v1902_v50 = vpop.f32.mrb[127].mxu1 }
 0x22e   : > { %2494 = vst [vmem:[%s4775_s3 + $0x760] sm:$0xff] %v2169_v49  ;;  %2520 = vst [vmem:[%s4775_s3 + $0x830] sm:$0xff] %v1902_v50 }
 0x230   : > { %v3506_v51 = vpop.f32.mrb[128].mxu0  ;;  %v1906_v52 = vpop.f32.mrb[128].mxu1 }
 0x231   : > { %2503 = vst [vmem:[%s4775_s3 + $0x7a8] sm:$0xff] %v3506_v51  ;;  %v2179_v53 = vpop.f32.mrb[129].mxu0  ;;  %2522 = vst [vmem:[%s4775_s3 + $0x840] sm:$0xff] %v1906_v52  ;;  %v1908_v0 = vpop.f32.mrb[129].mxu1 }
 0x232   : > { %2500 = vst [vmem:[%s4775_s3 + $0x790] sm:$0xff] %v2179_v53  ;;  %2523 = vst [vmem:[%s4775_s3 + $0x848] sm:$0xff] %v1908_v0 }
 0x234   : > { %v3509_v54 = vpop.f32.mrb[130].mxu0  ;;  %v1912_v55 = vpop.f32.mrb[130].mxu1 }
 0x235   : > { %2509 = vst [vmem:[%s4775_s3 + $0x7d8] sm:$0xff] %v3509_v54  ;;  %v2189_v56 = vpop.f32.mrb[131].mxu0  ;;  %2525 = vst [vmem:[%s4775_s3 + $0x858] sm:$0xff] %v1912_v55  ;;  %v1914_v57 = vpop.f32.mrb[131].mxu1 }
 0x236   : > { %2506 = vst [vmem:[%s4775_s3 + $0x7c0] sm:$0xff] %v2189_v56  ;;  %2526 = vst [vmem:[%s4775_s3 + $0x860] sm:$0xff] %v1914_v57 }
 0x238   : > { %v3512_v58 = vpop.f32.mrb[132].mxu0  ;;  %v1918_v59 = vpop.f32.mrb[132].mxu1 }
 0x239   : > { %2515 = vst [vmem:[%s4775_s3 + $0x808] sm:$0xff] %v3512_v58  ;;  %v2199_v60 = vpop.f32.mrb[133].mxu0  ;;  %2528 = vst [vmem:[%s4775_s3 + $0x870] sm:$0xff] %v1918_v59  ;;  %v1920_v61 = vpop.f32.mrb[133].mxu1 }
 0x23a   : > { %2512 = vst [vmem:[%s4775_s3 + $0x7f0] sm:$0xff] %v2199_v60  ;;  %2529 = vst [vmem:[%s4775_s3 + $0x878] sm:$0xff] %v1920_v61 }
 0x23c   : > { %v3515_v62 = vpop.f32.mrb[134].mxu0  ;;  %v1924_v63 = vpop.f32.mrb[134].mxu1 }
 0x23d   : > { %2521 = vst [vmem:[%s4775_s3 + $0x838] sm:$0xff] %v3515_v62  ;;  %v2209_v1 = vpop.f32.mrb[135].mxu0  ;;  %2531 = vst [vmem:[%s4775_s3 + $0x888] sm:$0xff] %v1924_v63  ;;  %v1926_v2 = vpop.f32.mrb[135].mxu1 }
 0x23e   : > { %2518 = vst [vmem:[%s4775_s3 + $0x820] sm:$0xff] %v2209_v1  ;;  %2532 = vst [vmem:[%s4775_s3 + $0x890] sm:$0xff] %v1926_v2 }
 0x240   : > { %v3518_v3 = vpop.f32.mrb[136].mxu0  ;;  %v1930_v4 = vpop.f32.mrb[136].mxu1 }
 0x241   : > { %2527 = vst [vmem:[%s4775_s3 + $0x868] sm:$0xff] %v3518_v3  ;;  %v2219_v5 = vpop.f32.mrb[137].mxu0  ;;  %2534 = vst [vmem:[%s4775_s3 + $0x8a0] sm:$0xff] %v1930_v4  ;;  %v1932_v6 = vpop.f32.mrb[137].mxu1 }
 0x242   : > { %2524 = vst [vmem:[%s4775_s3 + $0x850] sm:$0xff] %v2219_v5  ;;  %2535 = vst [vmem:[%s4775_s3 + $0x8a8] sm:$0xff] %v1932_v6 }
 0x244   : > { %v3521_v7 = vpop.f32.mrb[138].mxu0  ;;  %v1936_v8 = vpop.f32.mrb[138].mxu1 }
 0x245   : > { %2533 = vst [vmem:[%s4775_s3 + $0x898] sm:$0xff] %v3521_v7  ;;  %v2229_v9 = vpop.f32.mrb[139].mxu0  ;;  %2537 = vst [vmem:[%s4775_s3 + $0x8b8] sm:$0xff] %v1936_v8  ;;  %v1938_v10 = vpop.f32.mrb[139].mxu1 }
 0x246   : > { %2530 = vst [vmem:[%s4775_s3 + $0x880] sm:$0xff] %v2229_v9  ;;  %2538 = vst [vmem:[%s4775_s3 + $0x8c0] sm:$0xff] %v1938_v10 }
 0x248   : > { %v3524_v11 = vpop.f32.mrb[140].mxu0  ;;  %v1942_v12 = vpop.f32.mrb[140].mxu1 }
 0x249   : > { %2539 = vst [vmem:[%s4775_s3 + $0x8c8] sm:$0xff] %v3524_v11  ;;  %v2239_v13 = vpop.f32.mrb[141].mxu0  ;;  %2540 = vst [vmem:[%s4775_s3 + $0x8d0] sm:$0xff] %v1942_v12  ;;  %v1944_v14 = vpop.f32.mrb[141].mxu1 }
 0x24a   : > { %2536 = vst [vmem:[%s4775_s3 + $0x8b0] sm:$0xff] %v2239_v13  ;;  %2541 = vst [vmem:[%s4775_s3 + $0x8d8] sm:$0xff] %v1944_v14 }
 0x24c   : > { %v3527_v15 = vpop.f32.mrb[142].mxu0  ;;  %v1948_v16 = vpop.f32.mrb[142].mxu1 }
 0x24d   : > { %2545 = vst [vmem:[%s4775_s3 + $0x8f8] sm:$0xff] %v3527_v15  ;;  %v2249_v17 = vpop.f32.mrb[143].mxu0  ;;  %2543 = vst [vmem:[%s4775_s3 + $0x8e8] sm:$0xff] %v1948_v16  ;;  %v1950_v18 = vpop.f32.mrb[143].mxu1 }
 0x24e   : > { %2542 = vst [vmem:[%s4775_s3 + $0x8e0] sm:$0xff] %v2249_v17  ;;  %2544 = vst [vmem:[%s4775_s3 + $0x8f0] sm:$0xff] %v1950_v18 }
 0x24f   : > { %3777 = shalt.err (!%p3774_p3)
}
 0x250   : > { %s3778_s22 = scalar_lea.hbm %s5225_s8, 36864  ;;  %s3782_s25 = scalar_lea.hbm %s5278_s2, 73728 }
 0x251   : > { %p3779_p4 = scmp.ne.s32.totalorder %s5225_s8, %s3778_s22  ;;  %p3783_p9 = scmp.lt.u32.totalorder %s5225_s8, %s5278_s2 }
 0x252   : > { %p3784_p10 = scmp.lt.u32.totalorder %s3782_s25, %s3778_s22  ;;  %p3786_p12 = scmp.lt.u32.totalorder %s3778_s22, %s5225_s8 }
 0x253   : > { %p3780_p7 = pnand %p3779_p4, %p3884_p5 }
 0x254   : > { %p3785_p11 = por %p3784_p10, %p3783_p9 }
 0x255   : > { %p3781_p8 = pneg %p3780_p7 }
 0x256   : > { %p3787_p13 = por %p3786_p12, %p3785_p11 }
 0x258   : > { %p3788_p0 = pnand %p3787_p13, %p3781_p8 }
 0x25a   : > { %3791 = shalt.err (!%p3788_p0)
}
 0x25b   : > { %s3829_s28 = smov 384   ;;  %s3830_s29 = smov 24  }
 0x25c   : > { %3723 = dma.vmem_to_hbm [thread:$0]  (%p3884_p5), %s5227_s5, 36864, %s5225_s8, %s5235_s13, %s3829_s28, %s3829_s28, %s3830_s29  }
 0x25d PF: > { %p3729_p1 = scmp.ge.s32.totalorder %s3826_s12, 2  ;;  %s2576_s30 = sand.u32 1, %s3814_s9  }
 0x25e   : > { %s2577_s3 = scalar_lea.sflag [#allocation3], %s2576_s30 }
 0x25f   : > { %p3726_p2 = pnand %p3729_p1, %p3888_p6 }
 0x261   : > { %3809 = dma.done.wait (!%p3726_p2), %s2577_s3, 36864  }
 0x262   : > { %3811 = vsyncadd (!%p3726_p2), %s2577_s3, 4294930432  ;;  %p12_p3 = scmp.ge.s32.totalorder %s3871_s15, 4   ;;  %s5283_s9 = smov %s3818_s10 }
 0x263   : > { %s5284_s10 = smov %s3822_s11  ;;  %s5285_s11 = smov %s3882_s18 }
 0x264   : > { %s5286_s12 = smov %s3871_s15  ;;  %14 = sbr.rel (!%p12_p3) target bundleno = 3 (0x3), region = 66 }
 0x26b   :  { %2582 = vsyncpa [#allocation3], 1 }
 0x26c   :  { %2584 = vsyncpa [#allocation3 + $0x1], 1 }

</bundles_post_ra>
